<compile_context>
chip_gen: v6e
topology: v6e:2x2x1
jax: 0.10.0
libtpu: 0.0.40
codegen_flags: <defaults>
</compile_context>

<pallas_src>
import jax
import jax.numpy as jnp
import numpy as np
from jax import lax
from jax.experimental import pallas as pl
from jax.experimental.pallas import tpu as pltpu


# ------------------------------ fused kernel ------------------------------

def _smallnet_kernel(xb_ref, w1b_ref, b1r_ref, w2b_ref, b2r_ref,
                     wf1_ref, bf1r_ref, wf2_ref, bf2r_ref, out_ref):
    tb = out_ref.shape[0]                      # batch tile (multiple of 8)

    w1b = w1b_ref[...]                         # (140, 256) bf16, dj merged along N
    b1r = b1r_ref[...]                         # (1, 128) f32
    w2b = w2b_ref[...]                         # (640, 256) bf16, dj merged along N
    b2r = b2r_ref[...]                         # (1, 128) f32
    wf1 = wf1_ref[...]                         # (512, 128) bf16
    bf1 = bf1r_ref[...]                        # (1, 128) f32
    wf2 = wf2_ref[...]                         # (128, 128) bf16
    bf2 = bf2r_ref[...]                        # (1, 128) f32 (pad lanes = -1e30)

    # ---- conv1 (1->10, k=5) + 2x2 max-pool + bias + relu -------------------
    # Pre-banded LHS slabs from the wrapper:
    #   xb_ref[0, 2p+di][r*tb + b, kh*28 + w] = x[b, 4r + 2p + di + kh, w]
    # RHS: w1b[kh*28+w, dj*128 + px*10 + co] = w1[co,0,kh, w-2px-dj] (0 if OOB)
    h1 = []                                    # h1[p][r*tb+b, px*10+co], py = 2r+p
    for p in range(2):
        acc = None
        for di in range(2):
            lhs = xb_ref[0, 2 * p + di]        # (6*tb, 140) bf16
            r = jnp.dot(lhs, w1b, preferred_element_type=jnp.float32)   # (6*tb, 256)
            m = jnp.maximum(r[:, :128], r[:, 128:])                     # dj max
            acc = m if acc is None else jnp.maximum(acc, m)             # di max
        h1.append(jnp.maximum(acc + b1r, 0.0).astype(jnp.bfloat16))     # (6*tb, 128)

    # ---- conv2 (10->20, k=5) + 2x2 max-pool + bias + relu ------------------
    # Single shared 768-lane LHS: slab t holds h1 rows 2*qy + t (t = di + kh).
    lhs2 = jnp.concatenate(
        [h1[t % 2][(t // 2) * tb:(t // 2 + 4) * tb, :] for t in range(6)],
        axis=-1)                               # (4*tb, 768) bf16, 128-aligned concat
    acc2 = None
    for di in range(2):                        # di row-shift = 128-aligned lane slice
        r = jnp.dot(lhs2[:, di * 128:di * 128 + 640], w2b,
                    preferred_element_type=jnp.float32)                 # (4*tb, 256)
        m = jnp.maximum(r[:, :128], r[:, 128:])                         # dj max
        acc2 = m if acc2 is None else jnp.maximum(acc2, m)              # di max
    h2 = jnp.maximum(acc2 + b2r, 0.0).astype(jnp.bfloat16)  # (4*tb,128): (qy,b) x (qx*20+do)

    # ---- flatten (folded into fc1 weight) + fc1 + relu + fc2 + log_softmax --
    flat = jnp.concatenate([h2[q * tb:(q + 1) * tb, :] for q in range(4)],
                           axis=-1)                                     # (tb, 512)
    z1 = jnp.maximum(
        jnp.dot(flat, wf1, preferred_element_type=jnp.float32) + bf1, 0.0)   # (tb, 128)
    logits = jnp.dot(z1.astype(jnp.bfloat16), wf2,
                     preferred_element_type=jnp.float32) + bf2          # (tb, 128)
    mx = jnp.max(logits, axis=-1, keepdims=True)     # pad lanes ~ -1e30: ignored
    shifted = logits - mx
    lse = jnp.log(jnp.sum(jnp.exp(shifted), axis=-1, keepdims=True))
    out_ref[...] = shifted - lse                     # lane-dense (tb, 128) store


# -------------------- trace-time weight / input transforms -----------------

def _conv1_band(w1):
    """(140,256): band[kh*28+w, dj*128 + px*10+co] = w1[co,0,kh, w-2px-dj] (0 if OOB)."""
    w = w1[:, 0]                                           # (10, 5, 5)
    kh = jnp.arange(5).reshape(5, 1, 1, 1, 1)
    wc = jnp.arange(28).reshape(1, 28, 1, 1, 1)
    dj = jnp.arange(2).reshape(1, 1, 2, 1, 1)
    px = jnp.arange(12).reshape(1, 1, 1, 12, 1)
    co = jnp.arange(10).reshape(1, 1, 1, 1, 10)
    kw = wc - 2 * px - dj
    vals = w[co, kh, jnp.clip(kw, 0, 4)]
    band = jnp.where((kw >= 0) & (kw <= 4), vals, 0.0)     # (5, 28, 2, 12, 10)
    band = band.reshape(140, 2, 120)
    band = jnp.pad(band, ((0, 0), (0, 0), (0, 8)))         # N pad 120 -> 128
    return band.reshape(140, 256).astype(jnp.bfloat16)


def _conv2_band(w2):
    """(640,256): band[kh*128 + px*10+ci, dj*128 + qx*20+do] = w2[do,ci,kh, px-2qx-dj]."""
    kh = jnp.arange(5).reshape(5, 1, 1, 1, 1, 1)
    px = jnp.arange(12).reshape(1, 12, 1, 1, 1, 1)
    ci = jnp.arange(10).reshape(1, 1, 10, 1, 1, 1)
    dj = jnp.arange(2).reshape(1, 1, 1, 2, 1, 1)
    qx = jnp.arange(4).reshape(1, 1, 1, 1, 4, 1)
    do = jnp.arange(20).reshape(1, 1, 1, 1, 1, 20)
    kw = px - 2 * qx - dj
    vals = w2[do, ci, kh, jnp.clip(kw, 0, 4)]
    band = jnp.where((kw >= 0) & (kw <= 4), vals, 0.0)     # (5, 12, 10, 2, 4, 20)
    band = band.reshape(5, 120, 2, 80)
    band = jnp.pad(band, ((0, 0), (0, 8), (0, 0), (0, 48)))  # K slab 120->128, N 80->128
    return band.reshape(640, 256).astype(jnp.bfloat16)


def _conv1_lhs_band(x_pad, nt, tb):
    """(nt, 4, 6*tb, 140) bf16: xb[ti, 2p+di, r*tb+b, kh*28+w] = x[ti*tb+b, 4r+2p+di+kh, w]."""
    rows = (np.arange(4)[:, None, None]          # base = 2p + di
            + 4 * np.arange(6)[None, :, None]    # r
            + np.arange(5)[None, None, :])       # kh    -> (4, 6, 5), max = 27
    xb = x_pad[:, rows, :]                       # (pad_b, 4, 6, 5, 28)
    xb = xb.reshape(nt, tb, 4, 6, 5, 28).transpose(0, 2, 3, 1, 4, 5)
    return xb.reshape(nt, 4, 6 * tb, 140).astype(jnp.bfloat16)


def _round_up(n, m):
    return ((n + m - 1) // m) * m


# ------------------------------ forward pass ------------------------------

def smallnet_forward(x_nchw, params, *, max_tile_b=256):
    w1, b1, w2, b2, wf1, bf1, wf2, bf2 = params
    b = x_nchw.shape[0]

    tb_full = _round_up(b, 8)
    tb = min(max_tile_b, tb_full)
    if tb == tb_full and tb_full >= 16:
        # keep >= 2 grid steps so the "parallel" axis splits over v7x's 2 TCs
        tb = _round_up((tb_full + 1) // 2, 8)
    pad_b = _round_up(b, tb)
    nt = pad_b // tb

    x = x_nchw[:, 0, :, :].astype(jnp.float32)             # (B, 28, 28)
    x = jnp.pad(x, ((0, pad_b - b), (0, 0), (0, 0)))
    xband = _conv1_lhs_band(x, nt, tb)                     # (nt, 4, 6*tb, 140) bf16

    w1b = _conv1_band(w1)                                  # (140, 256) bf16
    b1r = jnp.pad(jnp.tile(b1, 12), (0, 8)).reshape(1, 128).astype(jnp.float32)
    w2b = _conv2_band(w2)                                  # (640, 256) bf16
    b2r = jnp.pad(jnp.tile(b2, 4), (0, 48)).reshape(1, 128).astype(jnp.float32)

    # fold PyTorch NCHW flatten (f = do*16 + qy*4 + qx) into the fc1 weight,
    # matching the kernel's flat layout (qy*128 + qx*20 + do); pad to 128 lanes.
    wf1p = jnp.transpose(wf1.reshape(50, 20, 4, 4), (2, 3, 1, 0)).reshape(4, 80, 50)
    wf1p = jnp.pad(wf1p, ((0, 0), (0, 48), (0, 78))).reshape(512, 128).astype(jnp.bfloat16)
    bf1r = jnp.pad(bf1, (0, 78)).reshape(1, 128).astype(jnp.float32)
    wf2p = jnp.pad(wf2.T, ((0, 78), (0, 118))).astype(jnp.bfloat16)    # (128, 128)
    bf2r = jnp.concatenate(
        [bf2.astype(jnp.float32), jnp.full((118,), -1e30, jnp.float32)]).reshape(1, 128)

    out = pl.pallas_call(
        _smallnet_kernel,
        out_shape=jax.ShapeDtypeStruct((pad_b, 128), jnp.float32),
        grid_spec=pltpu.PrefetchScalarGridSpec(
            num_scalar_prefetch=0,
            grid=(nt,),
            in_specs=[
                pl.BlockSpec((1, 4, 6 * tb, 140), lambda i: (i, 0, 0, 0)),
                pl.BlockSpec((140, 256), lambda i: (0, 0)),
                pl.BlockSpec((1, 128), lambda i: (0, 0)),
                pl.BlockSpec((640, 256), lambda i: (0, 0)),
                pl.BlockSpec((1, 128), lambda i: (0, 0)),
                pl.BlockSpec((512, 128), lambda i: (0, 0)),
                pl.BlockSpec((1, 128), lambda i: (0, 0)),
                pl.BlockSpec((128, 128), lambda i: (0, 0)),
                pl.BlockSpec((1, 128), lambda i: (0, 0)),
            ],
            out_specs=pl.BlockSpec((tb, 128), lambda i: (i, 0)),
        ),
        compiler_params=pltpu.CompilerParams(
            dimension_semantics=("parallel",),
            vmem_limit_bytes=32 * 1024 * 1024,
        ),
    )(xband, w1b, b1r, w2b, b2r, wf1p, bf1r, wf2p, bf2r)
    return out[:b, :10]


# --------------------------- pure-JAX reference ---------------------------

def smallnet_reference(x, params):
    w1, b1, w2, b2, wf1, bf1, wf2, bf2 = params
    dn = ('NCHW', 'OIHW', 'NCHW')
    c1 = lax.conv_general_dilated(x, w1, (1, 1), 'VALID', dimension_numbers=dn)
    c1 = c1 + b1[None, :, None, None]
    p1 = lax.reduce_window(c1, -jnp.inf, lax.max, (1, 1, 2, 2), (1, 1, 2, 2), 'VALID')
    h1 = jnp.maximum(p1, 0.0)
    c2 = lax.conv_general_dilated(h1, w2, (1, 1), 'VALID', dimension_numbers=dn)
    c2 = c2 + b2[None, :, None, None]
    p2 = lax.reduce_window(c2, -jnp.inf, lax.max, (1, 1, 2, 2), (1, 1, 2, 2), 'VALID')
    h2 = jnp.maximum(p2, 0.0)
    flat = h2.reshape(x.shape[0], 320)
    z1 = jnp.maximum(flat @ wf1.T + bf1, 0.0)
    z2 = z1 @ wf2.T + bf2
    return jax.nn.log_softmax(z2, axis=1)


# ---------------------------------- main ----------------------------------

if __name__ == "__main__":
    key = jax.random.PRNGKey(0)
    ks = jax.random.split(key, 9)
    params = (
        0.1 * jax.random.normal(ks[0], (10, 1, 5, 5), jnp.float32),   # conv1.weight
        0.1 * jax.random.normal(ks[1], (10,), jnp.float32),           # conv1.bias
        0.1 * jax.random.normal(ks[2], (20, 10, 5, 5), jnp.float32),  # conv2.weight
        0.1 * jax.random.normal(ks[3], (20,), jnp.float32),           # conv2.bias
        0.1 * jax.random.normal(ks[4], (50, 320), jnp.float32),       # fc1.weight
        0.1 * jax.random.normal(ks[5], (50,), jnp.float32),           # fc1.bias
        0.1 * jax.random.normal(ks[6], (10, 50), jnp.float32),        # fc2.weight
        0.1 * jax.random.normal(ks[7], (10,), jnp.float32),           # fc2.bias
    )
    x = jax.random.normal(ks[8], (2, 1, 28, 28), jnp.float32)

    fwd = jax.jit(smallnet_forward)
    ref_fn = jax.jit(smallnet_reference)

    out = jax.block_until_ready(fwd(x, params))
    ref = jax.block_until_ready(ref_fn(x, params))

    assert out.shape == (2, 10) and out.dtype == jnp.float32
    # bf16 matmul operands (f32 accumulation) -> tolerance loosened vs pure-f32.
    np.testing.assert_allclose(np.asarray(out), np.asarray(ref), rtol=5e-2, atol=5e-2)
    print("KERNEL_OK")
</pallas_src>

<mosaic_0001>
module attributes {stable_mosaic.version = 11 : i64} {
  func.func @_smallnet_kernel(%arg0: i32, %arg1: memref<1x4x48x140xbf16, #tpu.memory_space<vmem>>, %arg2: memref<140x256xbf16, #tpu.memory_space<vmem>>, %arg3: memref<1x128xf32, #tpu.memory_space<vmem>>, %arg4: memref<640x256xbf16, #tpu.memory_space<vmem>>, %arg5: memref<1x128xf32, #tpu.memory_space<vmem>>, %arg6: memref<512x128xbf16, #tpu.memory_space<vmem>>, %arg7: memref<1x128xf32, #tpu.memory_space<vmem>>, %arg8: memref<128x128xbf16, #tpu.memory_space<vmem>>, %arg9: memref<1x128xf32, #tpu.memory_space<vmem>>, %arg10: memref<8x128xf32, #tpu.memory_space<vmem>>) attributes {dimension_semantics = [#tpu.dimension_semantics<parallel>], iteration_bounds = array<i64: 1>, scalar_prefetch = 0 : i64, scratch_operands = 0 : i64, tpu.core_type = #tpu.core_type<tc>, window_params = [{transform_indices = @transform_0, window_bounds = array<i64: 1, 4, 48, 140>}, {pipeline_mode = #tpu.pipeline_mode<synchronous>, transform_indices = @transform_1, window_bounds = array<i64: 140, 256>}, {pipeline_mode = #tpu.pipeline_mode<synchronous>, transform_indices = @transform_2, window_bounds = array<i64: 1, 128>}, {pipeline_mode = #tpu.pipeline_mode<synchronous>, transform_indices = @transform_3, window_bounds = array<i64: 640, 256>}, {pipeline_mode = #tpu.pipeline_mode<synchronous>, transform_indices = @transform_4, window_bounds = array<i64: 1, 128>}, {pipeline_mode = #tpu.pipeline_mode<synchronous>, transform_indices = @transform_5, window_bounds = array<i64: 512, 128>}, {pipeline_mode = #tpu.pipeline_mode<synchronous>, transform_indices = @transform_6, window_bounds = array<i64: 1, 128>}, {pipeline_mode = #tpu.pipeline_mode<synchronous>, transform_indices = @transform_7, window_bounds = array<i64: 128, 128>}, {pipeline_mode = #tpu.pipeline_mode<synchronous>, transform_indices = @transform_8, window_bounds = array<i64: 1, 128>}, {transform_indices = @transform_9, window_bounds = array<i64: 8, 128>}]} {
    %c0 = arith.constant 0 : index
    %c0_0 = arith.constant 0 : index
    %0 = vector.load %arg2[%c0, %c0_0] : memref<140x256xbf16, #tpu.memory_space<vmem>>, vector<140x256xbf16>
    %c0_1 = arith.constant 0 : index
    %c0_2 = arith.constant 0 : index
    %1 = vector.load %arg3[%c0_1, %c0_2] : memref<1x128xf32, #tpu.memory_space<vmem>>, vector<1x128xf32>
    %c0_3 = arith.constant 0 : index
    %c0_4 = arith.constant 0 : index
    %2 = vector.load %arg4[%c0_3, %c0_4] : memref<640x256xbf16, #tpu.memory_space<vmem>>, vector<640x256xbf16>
    %c0_5 = arith.constant 0 : index
    %c0_6 = arith.constant 0 : index
    %3 = vector.load %arg5[%c0_5, %c0_6] : memref<1x128xf32, #tpu.memory_space<vmem>>, vector<1x128xf32>
    %c0_7 = arith.constant 0 : index
    %c0_8 = arith.constant 0 : index
    %4 = vector.load %arg6[%c0_7, %c0_8] : memref<512x128xbf16, #tpu.memory_space<vmem>>, vector<512x128xbf16>
    %c0_9 = arith.constant 0 : index
    %c0_10 = arith.constant 0 : index
    %5 = vector.load %arg7[%c0_9, %c0_10] : memref<1x128xf32, #tpu.memory_space<vmem>>, vector<1x128xf32>
    %c0_11 = arith.constant 0 : index
    %c0_12 = arith.constant 0 : index
    %6 = vector.load %arg8[%c0_11, %c0_12] : memref<128x128xbf16, #tpu.memory_space<vmem>>, vector<128x128xbf16>
    %c0_13 = arith.constant 0 : index
    %c0_14 = arith.constant 0 : index
    %7 = vector.load %arg9[%c0_13, %c0_14] : memref<1x128xf32, #tpu.memory_space<vmem>>, vector<1x128xf32>
    %c0_15 = arith.constant 0 : index
    %c0_16 = arith.constant 0 : index
    %c0_17 = arith.constant 0 : index
    %c0_18 = arith.constant 0 : index
    %8 = vector.load %arg1[%c0_15, %c0_16, %c0_17, %c0_18] : memref<1x4x48x140xbf16, #tpu.memory_space<vmem>>, vector<1x1x48x140xbf16>
    %9 = vector.shape_cast %8 : vector<1x1x48x140xbf16> to vector<48x140xbf16>
    %cst = arith.constant dense<0.000000e+00> : vector<48x256xf32>
    %10 = tpu.matmul %9, %0, %cst {dimension_numbers = #tpu.dot_dimension_numbers<[1], [0], [0], [1], [0, 0, 1, 1], [], []>} : vector<48x140xbf16>, vector<140x256xbf16>, vector<48x256xf32> -> vector<48x256xf32>
    %11 = vector.extract_strided_slice %10 {offsets = [0, 0], sizes = [48, 128], strides = [1, 1]} : vector<48x256xf32> to vector<48x128xf32>
    %12 = vector.extract_strided_slice %10 {offsets = [0, 128], sizes = [48, 128], strides = [1, 1]} : vector<48x256xf32> to vector<48x128xf32>
    %13 = arith.maximumf %11, %12 : vector<48x128xf32>
    %c0_19 = arith.constant 0 : index
    %c1 = arith.constant 1 : index
    %c0_20 = arith.constant 0 : index
    %c0_21 = arith.constant 0 : index
    %14 = vector.load %arg1[%c0_19, %c1, %c0_20, %c0_21] : memref<1x4x48x140xbf16, #tpu.memory_space<vmem>>, vector<1x1x48x140xbf16>
    %15 = vector.shape_cast %14 : vector<1x1x48x140xbf16> to vector<48x140xbf16>
    %cst_22 = arith.constant dense<0.000000e+00> : vector<48x256xf32>
    %16 = tpu.matmul %15, %0, %cst_22 {dimension_numbers = #tpu.dot_dimension_numbers<[1], [0], [0], [1], [0, 0, 1, 1], [], []>} : vector<48x140xbf16>, vector<140x256xbf16>, vector<48x256xf32> -> vector<48x256xf32>
    %17 = vector.extract_strided_slice %16 {offsets = [0, 0], sizes = [48, 128], strides = [1, 1]} : vector<48x256xf32> to vector<48x128xf32>
    %18 = vector.extract_strided_slice %16 {offsets = [0, 128], sizes = [48, 128], strides = [1, 1]} : vector<48x256xf32> to vector<48x128xf32>
    %19 = arith.maximumf %17, %18 : vector<48x128xf32>
    %20 = arith.maximumf %13, %19 : vector<48x128xf32>
    %21 = vector.broadcast %1 : vector<1x128xf32> to vector<48x128xf32>
    %22 = arith.addf %20, %21 : vector<48x128xf32>
    %cst_23 = arith.constant 0.000000e+00 : f32
    %23 = vector.broadcast %cst_23 : f32 to vector<48x128xf32>
    %24 = arith.maximumf %22, %23 : vector<48x128xf32>
    %25 = arith.truncf %24 : vector<48x128xf32> to vector<48x128xbf16>
    %c0_24 = arith.constant 0 : index
    %c2 = arith.constant 2 : index
    %c0_25 = arith.constant 0 : index
    %c0_26 = arith.constant 0 : index
    %26 = vector.load %arg1[%c0_24, %c2, %c0_25, %c0_26] : memref<1x4x48x140xbf16, #tpu.memory_space<vmem>>, vector<1x1x48x140xbf16>
    %27 = vector.shape_cast %26 : vector<1x1x48x140xbf16> to vector<48x140xbf16>
    %cst_27 = arith.constant dense<0.000000e+00> : vector<48x256xf32>
    %28 = tpu.matmul %27, %0, %cst_27 {dimension_numbers = #tpu.dot_dimension_numbers<[1], [0], [0], [1], [0, 0, 1, 1], [], []>} : vector<48x140xbf16>, vector<140x256xbf16>, vector<48x256xf32> -> vector<48x256xf32>
    %29 = vector.extract_strided_slice %28 {offsets = [0, 0], sizes = [48, 128], strides = [1, 1]} : vector<48x256xf32> to vector<48x128xf32>
    %30 = vector.extract_strided_slice %28 {offsets = [0, 128], sizes = [48, 128], strides = [1, 1]} : vector<48x256xf32> to vector<48x128xf32>
    %31 = arith.maximumf %29, %30 : vector<48x128xf32>
    %c0_28 = arith.constant 0 : index
    %c3 = arith.constant 3 : index
    %c0_29 = arith.constant 0 : index
    %c0_30 = arith.constant 0 : index
    %32 = vector.load %arg1[%c0_28, %c3, %c0_29, %c0_30] : memref<1x4x48x140xbf16, #tpu.memory_space<vmem>>, vector<1x1x48x140xbf16>
    %33 = vector.shape_cast %32 : vector<1x1x48x140xbf16> to vector<48x140xbf16>
    %cst_31 = arith.constant dense<0.000000e+00> : vector<48x256xf32>
    %34 = tpu.matmul %33, %0, %cst_31 {dimension_numbers = #tpu.dot_dimension_numbers<[1], [0], [0], [1], [0, 0, 1, 1], [], []>} : vector<48x140xbf16>, vector<140x256xbf16>, vector<48x256xf32> -> vector<48x256xf32>
    %35 = vector.extract_strided_slice %34 {offsets = [0, 0], sizes = [48, 128], strides = [1, 1]} : vector<48x256xf32> to vector<48x128xf32>
    %36 = vector.extract_strided_slice %34 {offsets = [0, 128], sizes = [48, 128], strides = [1, 1]} : vector<48x256xf32> to vector<48x128xf32>
    %37 = arith.maximumf %35, %36 : vector<48x128xf32>
    %38 = arith.maximumf %31, %37 : vector<48x128xf32>
    %39 = vector.broadcast %1 : vector<1x128xf32> to vector<48x128xf32>
    %40 = arith.addf %38, %39 : vector<48x128xf32>
    %cst_32 = arith.constant 0.000000e+00 : f32
    %41 = vector.broadcast %cst_32 : f32 to vector<48x128xf32>
    %42 = arith.maximumf %40, %41 : vector<48x128xf32>
    %43 = arith.truncf %42 : vector<48x128xf32> to vector<48x128xbf16>
    %44 = vector.extract_strided_slice %25 {offsets = [0, 0], sizes = [32, 128], strides = [1, 1]} : vector<48x128xbf16> to vector<32x128xbf16>
    %45 = vector.extract_strided_slice %43 {offsets = [0, 0], sizes = [32, 128], strides = [1, 1]} : vector<48x128xbf16> to vector<32x128xbf16>
    %46 = vector.extract_strided_slice %25 {offsets = [8, 0], sizes = [32, 128], strides = [1, 1]} : vector<48x128xbf16> to vector<32x128xbf16>
    %47 = vector.extract_strided_slice %43 {offsets = [8, 0], sizes = [32, 128], strides = [1, 1]} : vector<48x128xbf16> to vector<32x128xbf16>
    %48 = vector.extract_strided_slice %25 {offsets = [16, 0], sizes = [32, 128], strides = [1, 1]} : vector<48x128xbf16> to vector<32x128xbf16>
    %49 = vector.extract_strided_slice %43 {offsets = [16, 0], sizes = [32, 128], strides = [1, 1]} : vector<48x128xbf16> to vector<32x128xbf16>
    %50 = tpu.concatenate %44, %45, %46, %47, %48, %49 in 1 : vector<32x128xbf16>, vector<32x128xbf16>, vector<32x128xbf16>, vector<32x128xbf16>, vector<32x128xbf16>, vector<32x128xbf16> -> vector<32x768xbf16>
    %51 = vector.extract_strided_slice %50 {offsets = [0, 0], sizes = [32, 640], strides = [1, 1]} : vector<32x768xbf16> to vector<32x640xbf16>
    %cst_33 = arith.constant dense<0.000000e+00> : vector<32x256xf32>
    %52 = tpu.matmul %51, %2, %cst_33 {dimension_numbers = #tpu.dot_dimension_numbers<[1], [0], [0], [1], [0, 0, 1, 1], [], []>} : vector<32x640xbf16>, vector<640x256xbf16>, vector<32x256xf32> -> vector<32x256xf32>
    %53 = vector.extract_strided_slice %52 {offsets = [0, 0], sizes = [32, 128], strides = [1, 1]} : vector<32x256xf32> to vector<32x128xf32>
    %54 = vector.extract_strided_slice %52 {offsets = [0, 128], sizes = [32, 128], strides = [1, 1]} : vector<32x256xf32> to vector<32x128xf32>
    %55 = arith.maximumf %53, %54 : vector<32x128xf32>
    %56 = vector.extract_strided_slice %50 {offsets = [0, 128], sizes = [32, 640], strides = [1, 1]} : vector<32x768xbf16> to vector<32x640xbf16>
    %cst_34 = arith.constant dense<0.000000e+00> : vector<32x256xf32>
    %57 = tpu.matmul %56, %2, %cst_34 {dimension_numbers = #tpu.dot_dimension_numbers<[1], [0], [0], [1], [0, 0, 1, 1], [], []>} : vector<32x640xbf16>, vector<640x256xbf16>, vector<32x256xf32> -> vector<32x256xf32>
    %58 = vector.extract_strided_slice %57 {offsets = [0, 0], sizes = [32, 128], strides = [1, 1]} : vector<32x256xf32> to vector<32x128xf32>
    %59 = vector.extract_strided_slice %57 {offsets = [0, 128], sizes = [32, 128], strides = [1, 1]} : vector<32x256xf32> to vector<32x128xf32>
    %60 = arith.maximumf %58, %59 : vector<32x128xf32>
    %61 = arith.maximumf %55, %60 : vector<32x128xf32>
    %62 = vector.broadcast %3 : vector<1x128xf32> to vector<32x128xf32>
    %63 = arith.addf %61, %62 : vector<32x128xf32>
    %cst_35 = arith.constant 0.000000e+00 : f32
    %64 = vector.broadcast %cst_35 : f32 to vector<32x128xf32>
    %65 = arith.maximumf %63, %64 : vector<32x128xf32>
    %66 = arith.truncf %65 : vector<32x128xf32> to vector<32x128xbf16>
    %67 = vector.extract_strided_slice %66 {offsets = [0, 0], sizes = [8, 128], strides = [1, 1]} : vector<32x128xbf16> to vector<8x128xbf16>
    %68 = vector.extract_strided_slice %66 {offsets = [8, 0], sizes = [8, 128], strides = [1, 1]} : vector<32x128xbf16> to vector<8x128xbf16>
    %69 = vector.extract_strided_slice %66 {offsets = [16, 0], sizes = [8, 128], strides = [1, 1]} : vector<32x128xbf16> to vector<8x128xbf16>
    %70 = vector.extract_strided_slice %66 {offsets = [24, 0], sizes = [8, 128], strides = [1, 1]} : vector<32x128xbf16> to vector<8x128xbf16>
    %71 = tpu.concatenate %67, %68, %69, %70 in 1 : vector<8x128xbf16>, vector<8x128xbf16>, vector<8x128xbf16>, vector<8x128xbf16> -> vector<8x512xbf16>
    %cst_36 = arith.constant dense<0.000000e+00> : vector<8x128xf32>
    %72 = tpu.matmul %71, %4, %cst_36 {dimension_numbers = #tpu.dot_dimension_numbers<[1], [0], [0], [1], [0, 0, 1, 1], [], []>} : vector<8x512xbf16>, vector<512x128xbf16>, vector<8x128xf32> -> vector<8x128xf32>
    %73 = vector.broadcast %5 : vector<1x128xf32> to vector<8x128xf32>
    %74 = arith.addf %72, %73 : vector<8x128xf32>
    %cst_37 = arith.constant 0.000000e+00 : f32
    %75 = vector.broadcast %cst_37 : f32 to vector<8x128xf32>
    %76 = arith.maximumf %74, %75 : vector<8x128xf32>
    %77 = arith.truncf %76 : vector<8x128xf32> to vector<8x128xbf16>
    %cst_38 = arith.constant dense<0.000000e+00> : vector<8x128xf32>
    %78 = tpu.matmul %77, %6, %cst_38 {dimension_numbers = #tpu.dot_dimension_numbers<[1], [0], [0], [1], [0, 0, 1, 1], [], []>} : vector<8x128xbf16>, vector<128x128xbf16>, vector<8x128xf32> -> vector<8x128xf32>
    %79 = vector.broadcast %7 : vector<1x128xf32> to vector<8x128xf32>
    %80 = arith.addf %78, %79 : vector<8x128xf32>
    %cst_39 = arith.constant dense<0xFF800000> : vector<8xf32>
    %81 = vector.multi_reduction <maximumf>, %80, %cst_39 [1] : vector<8x128xf32> to vector<8xf32>
    %82 = vector.shape_cast %81 : vector<8xf32> to vector<8x1xf32>
    %83 = vector.broadcast %82 : vector<8x1xf32> to vector<8x128xf32>
    %84 = arith.subf %80, %83 : vector<8x128xf32>
    %85 = math.exp %84 : vector<8x128xf32>
    %cst_40 = arith.constant dense<0.000000e+00> : vector<8xf32>
    %86 = vector.multi_reduction <add>, %85, %cst_40 [1] : vector<8x128xf32> to vector<8xf32>
    %87 = vector.shape_cast %86 : vector<8xf32> to vector<8x1xf32>
    %88 = math.log %87 : vector<8x1xf32>
    %89 = vector.broadcast %88 : vector<8x1xf32> to vector<8x128xf32>
    %90 = arith.subf %84, %89 : vector<8x128xf32>
    %c0_41 = arith.constant 0 : index
    %c0_42 = arith.constant 0 : index
    %91 = vector.load %arg10[%c0_41, %c0_42] : memref<8x128xf32, #tpu.memory_space<vmem>>, vector<8x128xf32>
    tpu.vector_store %arg10[%c0_41, %c0_42], %90 {strides = array<i32>} : memref<8x128xf32, #tpu.memory_space<vmem>>, vector<8x128xf32>,
    return
  }
  func.func @transform_0(%arg0: i32) -> (i32, i32, i32, i32) {
    %c0_i32 = arith.constant 0 : i32
    %c0_i32_0 = arith.constant 0 : i32
    %c0_i32_1 = arith.constant 0 : i32
    %c0_i32_2 = arith.constant 0 : i32
    return %arg0, %c0_i32, %c0_i32_0, %c0_i32_1 : i32, i32, i32, i32
  }
  func.func @transform_1(%arg0: i32) -> (i32, i32) {
    %c0_i32 = arith.constant 0 : i32
    %c0_i32_0 = arith.constant 0 : i32
    %c0_i32_1 = arith.constant 0 : i32
    return %c0_i32, %c0_i32_0 : i32, i32
  }
  func.func @transform_2(%arg0: i32) -> (i32, i32) {
    %c0_i32 = arith.constant 0 : i32
    %c0_i32_0 = arith.constant 0 : i32
    %c0_i32_1 = arith.constant 0 : i32
    return %c0_i32, %c0_i32_0 : i32, i32
  }
  func.func @transform_3(%arg0: i32) -> (i32, i32) {
    %c0_i32 = arith.constant 0 : i32
    %c0_i32_0 = arith.constant 0 : i32
    %c0_i32_1 = arith.constant 0 : i32
    return %c0_i32, %c0_i32_0 : i32, i32
  }
  func.func @transform_4(%arg0: i32) -> (i32, i32) {
    %c0_i32 = arith.constant 0 : i32
    %c0_i32_0 = arith.constant 0 : i32
    %c0_i32_1 = arith.constant 0 : i32
    return %c0_i32, %c0_i32_0 : i32, i32
  }
  func.func @transform_5(%arg0: i32) -> (i32, i32) {
    %c0_i32 = arith.constant 0 : i32
    %c0_i32_0 = arith.constant 0 : i32
    %c0_i32_1 = arith.constant 0 : i32
    return %c0_i32, %c0_i32_0 : i32, i32
  }
  func.func @transform_6(%arg0: i32) -> (i32, i32) {
    %c0_i32 = arith.constant 0 : i32
    %c0_i32_0 = arith.constant 0 : i32
    %c0_i32_1 = arith.constant 0 : i32
    return %c0_i32, %c0_i32_0 : i32, i32
  }
  func.func @transform_7(%arg0: i32) -> (i32, i32) {
    %c0_i32 = arith.constant 0 : i32
    %c0_i32_0 = arith.constant 0 : i32
    %c0_i32_1 = arith.constant 0 : i32
    return %c0_i32, %c0_i32_0 : i32, i32
  }
  func.func @transform_8(%arg0: i32) -> (i32, i32) {
    %c0_i32 = arith.constant 0 : i32
    %c0_i32_0 = arith.constant 0 : i32
    %c0_i32_1 = arith.constant 0 : i32
    return %c0_i32, %c0_i32_0 : i32, i32
  }
  func.func @transform_9(%arg0: i32) -> (i32, i32) {
    %c0_i32 = arith.constant 0 : i32
    %c0_i32_0 = arith.constant 0 : i32
    return %arg0, %c0_i32 : i32, i32
  }
}

</mosaic_0001>

<bundles_post_ra>
// kernel: tile.13
= control target key start
LH: loop header
LB: loop body
LE: loop exit
PB: predicated region body
PF: predicated region fallthrough
CT: control target
= control target key end

     0   :  { %s28_s0 = inlined_call_operand.vmem [shape: f32[10], index: 0, kind: input, shape index: {}]   ;;  %s29_s1 = inlined_call_operand.vmem [shape: f32[12,10], index: 1, kind: output, shape index: {}]  }
   0x1   :  { %v4_v0 = vld [vmem:[%s28_s0] ss:$0 sm:$0xff] }
   0x2   :  { %5 = vst [vmem:[%s29_s1] sm:$0xff] %v4_v0  ;;  %8 = vst [vmem:[%s29_s1 + $0x8] sm:$0xff] %v4_v0 }

// kernel: tile.14
= control target key start
LH: loop header
LB: loop body
LE: loop exit
PB: predicated region body
PF: predicated region fallthrough
CT: control target
= control target key end

     0   :  { %s101_s10 = smov 110   ;;  %s102_s11 = smov 90   ;;  %vm3_vm0 = vcmask 80896   ;;  %vm9_vm1 = vcmask 982896   ;;  %vm15_vm2 = vcmask 900896   ;;  %vm21_vm3 = vcmask 818896   ;;  %s161_s0 = inlined_call_operand.vmem [shape: f32[12,10], index: 0, kind: input, shape index: {}]   ;;  %s162_s1 = inlined_call_operand.vmem [shape: f32[120], index: 1, kind: output, shape index: {}]  }
   0x1   :  { %v79_v0 = vld [vmem:[%s161_s0 + $0xb] sm:$0x1]   ;;  %v81_v1 = vld [vmem:[%s161_s0 + $0x9] sm:$0x1]   ;;  %v80_v2 = vld [vmem:[%s161_s0 + $0xa] sm:$0x1]  }
   0x2   :  { %7 = vrot.lane.b32.xlu0 %v79_v0, %s101_s10  ;;  %19 = vrot.lane.b32.xlu1 %v81_v1, %s102_s11  ;;  %v82_v3 = vld [vmem:[%s161_s0 + $0x8] sm:$0x1]   ;;  %s103_s16 = smov 100   ;;  %s104_s17 = smov 80   ;;  %v83_v4 = vld [vmem:[%s161_s0 + $0x7] sm:$0x1]  }
   0x3   :  { %v2_v5 = vld [vmem:[%s161_s0] sm:$0x1]   ;;  %v84_v6 = vld [vmem:[%s161_s0 + $0x6] sm:$0x1]   ;;  %s105_s24 = smov 70   ;;  %s106_s25 = smov 60  }
   0x4   :  { %4 = vst.msk [vmem:[#allocation0] sm:$0x1] %vm3_vm0, %v2_v5   ;;  %v85_v7 = vld [vmem:[%s161_s0 + $0x5] sm:$0x1]   ;;  %v86_v8 = vld [vmem:[%s161_s0 + $0x4] sm:$0x1]  }
   0x5   :  { %s107_s30 = smov 50   ;;  %s108_s2 = smov 40   ;;  %v87_v9 = vld [vmem:[%s161_s0 + $0x3] sm:$0x1]   ;;  %v88_v10 = vld [vmem:[%s161_s0 + $0x2] sm:$0x1]  }
   0x6   :  { %13 = vrot.lane.b32.xlu0 %v80_v2, %s103_s16  ;;  %25 = vrot.lane.b32.xlu1 %v82_v3, %s104_s17  ;;  %s109_s7 = smov 30   ;;  %s110_s8 = smov 20   ;;  %v89_v11 = vld [vmem:[%s161_s0 + $0x1] sm:$0x1]   ;;  %vm27_vm4 = vcmask 736896   ;;  %vm33_vm5 = vcmask 654896  }
   0x7   :  { %s111_s0 = smov 10   ;;  %vm39_vm6 = vcmask 572896   ;;  %vm45_vm7 = vcmask 490896   ;;  %vm51_vm8 = vcmask 408896   ;;  %vm57_vm9 = vcmask 326896  }
   0x8   :  { %vm63_vm10 = vcmask 244896   ;;  %vm69_vm11 = vcmask 162896  }
   0xa   :  { %31 = vrot.lane.b32.xlu0 %v83_v4, %s105_s24  ;;  %37 = vrot.lane.b32.xlu1 %v84_v6, %s106_s25 }
   0xe   :  { %43 = vrot.lane.b32.xlu0 %v85_v7, %s107_s30  ;;  %49 = vrot.lane.b32.xlu1 %v86_v8, %s108_s2 }
  0x12   :  { %55 = vrot.lane.b32.xlu0 %v87_v9, %s109_s7  ;;  %61 = vrot.lane.b32.xlu1 %v88_v10, %s110_s8 }
  0x16   :  { %67 = vrot.lane.b32.xlu0 %v89_v11, %s111_s0 }
  0x74   :  { %v8_v12 = vpop.permute.xlu0 %7   ;;  %v20_v13 = vpop.permute.xlu1 %19  }
  0x75   :  { %10 = vst.msk [vmem:[#allocation0] sm:$0x1] %vm9_vm1, %v8_v12  }
  0x78   :  { %v14_v14 = vpop.permute.xlu0 %13   ;;  %v26_v15 = vpop.permute.xlu1 %25  }
  0x79   :  { %16 = vst.msk [vmem:[#allocation0] sm:$0x1] %vm15_vm2, %v14_v14  }
  0x7a   :  { %22 = vst.msk [vmem:[#allocation0] sm:$0x1] %vm21_vm3, %v20_v13  }
  0x7b   :  { %28 = vst.msk [vmem:[#allocation0] sm:$0x1] %vm27_vm4, %v26_v15  }
  0x7c   :  { %v32_v16 = vpop.permute.xlu0 %31   ;;  %v38_v17 = vpop.permute.xlu1 %37  }
  0x7d   :  { %34 = vst.msk [vmem:[#allocation0] sm:$0x1] %vm33_vm5, %v32_v16  }
  0x7e   :  { %40 = vst.msk [vmem:[#allocation0] sm:$0x1] %vm39_vm6, %v38_v17  }
  0x80   :  { %v44_v18 = vpop.permute.xlu0 %43   ;;  %v50_v19 = vpop.permute.xlu1 %49  }
  0x81   :  { %46 = vst.msk [vmem:[#allocation0] sm:$0x1] %vm45_vm7, %v44_v18  }
  0x82   :  { %52 = vst.msk [vmem:[#allocation0] sm:$0x1] %vm51_vm8, %v50_v19  }
  0x84   :  { %v56_v20 = vpop.permute.xlu0 %55   ;;  %v62_v21 = vpop.permute.xlu1 %61  }
  0x85   :  { %58 = vst.msk [vmem:[#allocation0] sm:$0x1] %vm57_vm9, %v56_v20  }
  0x86   :  { %64 = vst.msk [vmem:[#allocation0] sm:$0x1] %vm63_vm10, %v62_v21  }
  0x88   :  { %v68_v22 = vpop.permute.xlu0 %67  }
  0x89   :  { %70 = vst.msk [vmem:[#allocation0] sm:$0x1] %vm69_vm11, %v68_v22  }
  0x90   :  { %v75_v23 = vld [vmem:[#allocation0] sm:$0x1] }
  0x91   :  { %78 = vst [vmem:[%s162_s1] sm:$0x1] %v75_v23 }

// kernel: tile.18
= control target key start
LH: loop header
LB: loop body
LE: loop exit
PB: predicated region body
PF: predicated region fallthrough
CT: control target
= control target key end

     0   :  { %s22_s0 = inlined_call_operand.vmem [shape: f32[20], index: 0, kind: input, shape index: {}]   ;;  %s23_s1 = inlined_call_operand.vmem [shape: f32[4,20], index: 1, kind: output, shape index: {}]  }
   0x1   :  { %v4_v0 = vld [vmem:[%s22_s0] ss:$0 sm:$0xff] }
   0x2   :  { %5 = vst [vmem:[%s23_s1] sm:$0xf] %v4_v0 }

// kernel: tile.19
= control target key start
LH: loop header
LB: loop body
LE: loop exit
PB: predicated region body
PF: predicated region fallthrough
CT: control target
= control target key end

     0   :  { %vm8_vm0 = vcmask 162816   ;;  %s40_s8 = smov 20   ;;  %s41_s9 = smov 40   ;;  %vm14_vm1 = vcmask 654816   ;;  %vm20_vm2 = vcmask 490816   ;;  %vm26_vm3 = vcmask 326816   ;;  %s58_s0 = inlined_call_operand.vmem [shape: f32[4,20], index: 0, kind: input, shape index: {}]   ;;  %s59_s1 = inlined_call_operand.vmem [shape: f32[80], index: 1, kind: output, shape index: {}]  }
   0x1   :  { %v5_v0 = vld [vmem:[%s58_s0] sm:$0xf]  ;;  %s39_s0 = smov 60  }
   0x2   :  { %6 = vst [vmem:[#allocation1] sm:$0xf] %v5_v0 }
   0x9   :  { %v11_v1 = vld [vmem:[#allocation1 + $0x3] sm:$0x1]   ;;  %v23_v2 = vld [vmem:[#allocation1 + $0x1] sm:$0x1]   ;;  %v7_v3 = vld [vmem:[#allocation1] sm:$0x1]  }
   0xa   :  { %12 = vrot.lane.b32.xlu0 %v11_v1, %s39_s0  ;;  %24 = vrot.lane.b32.xlu1 %v23_v2, %s40_s8  ;;  %v17_v4 = vld [vmem:[#allocation1 + $0x2] sm:$0x1]   ;;  %9 = vst.msk [vmem:[#allocation0] sm:$0x1] %vm8_vm0, %v7_v3  }
   0xe   :  { %18 = vrot.lane.b32.xlu0 %v17_v4, %s41_s9 }
  0x7c   :  { %v13_v5 = vpop.permute.xlu0 %12   ;;  %v25_v6 = vpop.permute.xlu1 %24  }
  0x7d   :  { %15 = vst.msk [vmem:[#allocation0] sm:$0x1] %vm14_vm1, %v13_v5  }
  0x80   :  { %v19_v7 = vpop.permute.xlu0 %18  }
  0x81   :  { %21 = vst.msk [vmem:[#allocation0] sm:$0x1] %vm20_vm2, %v19_v7  }
  0x82   :  { %27 = vst.msk [vmem:[#allocation0] sm:$0x1] %vm26_vm3, %v25_v6  }
  0x89   :  { %v32_v8 = vld [vmem:[#allocation0] sm:$0x1] }
  0x8a   :  { %35 = vst [vmem:[%s59_s1] sm:$0x1] %v32_v8 }

// kernel: smallnet_forward.1
= control target key start
LH: loop header
LB: loop body
LE: loop exit
PB: predicated region body
PF: predicated region fallthrough
CT: control target
= control target key end

     0   :  { %vm336_vm0 = vcmask 97280   ;;  %vm346_vm1 = vcmask 1045504   ;;  %vm809_vm2 = vcmask 1043456   ;;  %vm2473_vm3 = vmmov 0   ;;  %s3567_s1 = inlined_call_operand.vmem [shape: bf16[140,256], index: 1, kind: input, shape index: {}]   ;;  %s3568_s0 = inlined_call_operand.vmem [shape: bf16[1,4,48,140], index: 0, kind: input, shape index: {}]   ;;  %s3569_s3 = inlined_call_operand.vmem [shape: bf16[640,256], index: 3, kind: input, shape index: {}]   ;;  %s3570_s2 = inlined_call_operand.vmem [shape: f32[1,128], index: 2, kind: input, shape index: {}]   ;;  %s3571_s5 = inlined_call_operand.vmem [shape: bf16[512,128], index: 5, kind: input, shape index: {}]   ;;  %s3572_s7 = inlined_call_operand.vmem [shape: bf16[128,128], index: 7, kind: input, shape index: {}]   ;;  %s3573_s4 = inlined_call_operand.vmem [shape: f32[1,128], index: 4, kind: input, shape index: {}]   ;;  %s3574_s6 = inlined_call_operand.vmem [shape: f32[1,128], index: 6, kind: input, shape index: {}]   ;;  %s3575_s8 = inlined_call_operand.vmem [shape: f32[1,128], index: 8, kind: input, shape index: {}]   ;;  %s3576_s9 = inlined_call_operand.vmem [shape: f32[8,128], index: 9, kind: output, shape index: {}]  }
   0x1   :  { %v2527_v0 = vld [vmem:[%s3567_s1 + $0x74] ss:$8 sps:$4 sm:$0xff]   ;;  %v2532_v1 = vld [vmem:[%s3567_s1 + $0x70] ss:$8 sps:$4 sm:$0xff]   ;;  %v2539_v2 = vld [vmem:[%s3567_s1 + $0x64] ss:$8 sps:$4 sm:$0xff]  }
   0x2   :  { %353 = vmatprep.subr.bf16.mxu0 %v2527_v0  ;;  %465 = vmatprep.subr.bf16.mxu1 %v2527_v0  ;;  %v2546_v3 = vld [vmem:[%s3567_s1 + $0x60] ss:$8 sps:$4 sm:$0xff]   ;;  %v2553_v4 = vld [vmem:[%s3567_s1 + $0x54] ss:$8 sps:$4 sm:$0xff]   ;;  %v2560_v5 = vld [vmem:[%s3567_s1 + $0x50] ss:$8 sps:$4 sm:$0xff]  }
   0x3   :  { %354 = vmatpush1.bf16.msra.mxu0 %v2532_v1  ;;  %466 = vmatpush1.bf16.msra.mxu1 %v2532_v1  ;;  %v2567_v6 = vld [vmem:[%s3567_s1 + $0x44] ss:$8 sps:$4 sm:$0xff]   ;;  %v2574_v7 = vld [vmem:[%s3567_s1 + $0x40] ss:$8 sps:$4 sm:$0xff]   ;;  %v2581_v8 = vld [vmem:[%s3567_s1 + $0x34] ss:$8 sps:$4 sm:$0xff]  }
   0x4   :  { %355 = vmatprep.subr.bf16.mxu0 %v2539_v2  ;;  %467 = vmatprep.subr.bf16.mxu1 %v2539_v2  ;;  %v2273_v9 = vld [vmem:[%s3568_s0 + $0x4] ss:$8 sps:$4 sm:$0xff]   ;;  %v2276_v10 = vld [vmem:[%s3568_s0 + $0x34] ss:$8 sps:$4 sm:$0xff]   ;;  %v2594_v11 = vld [vmem:[%s3567_s1 + $0x30] ss:$8 sps:$4 sm:$0xff]  }
   0x5   :  { %v2601_v12 = vld [vmem:[%s3567_s1 + $0x24] ss:$8 sps:$4 sm:$0xff]   ;;  %1993 = vmatprep.mubr.msk.bf16.mxu0 %vm336_vm0, %v2273_v9  ;;  %2009 = vmatprep.mubr.msk.bf16.mxu1 %vm336_vm0, %v2276_v10  ;;  %v2610_v13 = vld [vmem:[%s3567_s1 + $0x20] ss:$8 sps:$4 sm:$0xff]   ;;  %v2617_v14 = vld [vmem:[%s3567_s1 + $0x14] ss:$8 sps:$4 sm:$0xff]  }
   0x6   :  { %v2624_v15 = vld [vmem:[%s3567_s1 + $0x10] ss:$8 sps:$4 sm:$0xff]   ;;  %v2631_v16 = vld [vmem:[%s3567_s1 + $0x4] ss:$8 sps:$4 sm:$0xff]   ;;  %v2638_v17 = vld [vmem:[%s3567_s1] ss:$8 sps:$4 sm:$0xff]  }
   0x7   :  { %356 = vmatpush1.bf16.msra.mxu0 %v2546_v3  ;;  %468 = vmatpush1.bf16.msra.mxu1 %v2546_v3  ;;  %v2643_v18 = vld [vmem:[%s3567_s1 + $0x84] ss:$8 sps:$4 sm:$0x3f]   ;;  %v2270_v19 = vld [vmem:[%s3567_s1 + $0x80] ss:$8 sps:$4 sm:$0x3f]  }
   0x8   :  { %357 = vmatprep.subr.bf16.mxu0 %v2553_v4  ;;  %469 = vmatprep.subr.bf16.mxu1 %v2553_v4  ;;  %v2657_v20 = vsel %vm346_vm1, %v2270_v19, 0  ;;  %v2271_v21 = vld [vmem:[%s3568_s0] ss:$8 sps:$4 sm:$0xff]   ;;  %v2274_v22 = vld [vmem:[%s3568_s0 + $0x30] ss:$8 sps:$4 sm:$0xff]  }
   0x9   :  { %v2277_v23 = vld [vmem:[%s3568_s0 + $0x14] ss:$8 sps:$4 sm:$0xff]   ;;  %v2279_v24 = vld [vmem:[%s3568_s0 + $0x44] ss:$8 sps:$4 sm:$0xff]   ;;  %v2281_v25 = vld [vmem:[%s3568_s0 + $0x10] ss:$8 sps:$4 sm:$0xff]  }
   0xa   :  { %v2282_v26 = vld [vmem:[%s3568_s0 + $0x40] ss:$8 sps:$4 sm:$0xff]   ;;  %v2283_v27 = vld [vmem:[%s3568_s0 + $0x24] ss:$8 sps:$4 sm:$0xff]   ;;  %v2285_v28 = vld [vmem:[%s3568_s0 + $0x54] ss:$8 sps:$4 sm:$0xff]  }
   0xb   :  { %358 = vmatpush1.bf16.msra.mxu0 %v2560_v5  ;;  %470 = vmatpush1.bf16.msra.mxu1 %v2560_v5  ;;  %v2287_v29 = vld [vmem:[%s3568_s0 + $0x20] ss:$8 sps:$4 sm:$0xff]   ;;  %v2288_v30 = vld [vmem:[%s3568_s0 + $0x50] ss:$8 sps:$4 sm:$0xff]   ;;  %v2291_v31 = vld [vmem:[%s3568_s0 + $0x64] ss:$8 sps:$4 sm:$0xff]  }
   0xc   :  { %359 = vmatprep.subr.bf16.mxu0 %v2567_v6  ;;  %471 = vmatprep.subr.bf16.mxu1 %v2567_v6  ;;  %v2294_v32 = vld [vmem:[%s3568_s0 + $0x94] ss:$8 sps:$4 sm:$0xff]   ;;  %v2289_v34 = vld [vmem:[%s3568_s0 + $0x60] ss:$8 sps:$4 sm:$0xff]   ;;  %v2292_v35 = vld [vmem:[%s3568_s0 + $0x90] ss:$8 sps:$4 sm:$0xff]  }
   0xd   :  { %v2742_v33 = vld [vmem:[%s3569_s3 + $0x74] ss:$8 sps:$4 sm:$0xff]   ;;  %v2297_v37 = vld [vmem:[%s3568_s0 + $0xa4] ss:$8 sps:$4 sm:$0xff]   ;;  %v2761_v38 = vld [vmem:[%s3569_s3 + $0x70] ss:$8 sps:$4 sm:$0xff]  }
   0xe   :  { %v2295_v36 = vld [vmem:[%s3568_s0 + $0x74] ss:$8 sps:$4 sm:$0xff]   ;;  %v2767_v39 = vld [vmem:[%s3569_s3 + $0x64] ss:$8 sps:$4 sm:$0xff]   ;;  %v2775_v40 = vld [vmem:[%s3569_s3 + $0x60] ss:$8 sps:$4 sm:$0xff]  }
   0xf   :  { %360 = vmatpush1.bf16.msra.mxu0 %v2574_v7  ;;  %472 = vmatpush1.bf16.msra.mxu1 %v2574_v7  ;;  %v2781_v41 = vld [vmem:[%s3569_s3 + $0x54] ss:$8 sps:$4 sm:$0xff]   ;;  %v2299_v42 = vld [vmem:[%s3568_s0 + $0x70] ss:$8 sps:$4 sm:$0xff]   ;;  %v2300_v43 = vld [vmem:[%s3568_s0 + $0xa0] ss:$8 sps:$4 sm:$0xff]  }
  0x10   :  { %361 = vmatprep.subr.bf16.mxu0 %v2581_v8  ;;  %473 = vmatprep.subr.bf16.mxu1 %v2581_v8  ;;  %v2301_v44 = vld [vmem:[%s3568_s0 + $0x84] ss:$8 sps:$4 sm:$0xff]   ;;  %v2303_v45 = vld [vmem:[%s3568_s0 + $0xb4] ss:$8 sps:$4 sm:$0xff]   ;;  %v2799_v46 = vld [vmem:[%s3569_s3 + $0x50] ss:$8 sps:$4 sm:$0xff]  }
  0x11   :  { %v2305_v47 = vld [vmem:[%s3568_s0 + $0x80] ss:$8 sps:$4 sm:$0xff]   ;;  %v2306_v48 = vld [vmem:[%s3568_s0 + $0xb0] ss:$8 sps:$4 sm:$0xff]   ;;  %v2814_v49 = vld [vmem:[%s3569_s3 + $0x174] ss:$8 sps:$4 sm:$0xff]  }
  0x12   :  { %v2819_v50 = vld [vmem:[%s3569_s3 + $0x170] ss:$8 sps:$4 sm:$0xff]   ;;  %v2824_v51 = vld [vmem:[%s3569_s3 + $0x44] ss:$8 sps:$4 sm:$0xff]   ;;  %v2830_v52 = vld [vmem:[%s3569_s3 + $0x40] ss:$8 sps:$4 sm:$0xff]  }
  0x13   :  { %362 = vmatpush1.bf16.msra.mxu0 %v2594_v11  ;;  %474 = vmatpush1.bf16.msra.mxu1 %v2594_v11  ;;  %v2838_v53 = vld [vmem:[%s3569_s3 + $0x164] ss:$8 sps:$4 sm:$0xff]   ;;  %v2843_v54 = vld [vmem:[%s3569_s3 + $0x160] ss:$8 sps:$4 sm:$0xff]   ;;  %v2848_v55 = vld [vmem:[%s3569_s3 + $0x34] ss:$8 sps:$4 sm:$0xff]  }
  0x14   :  { %363 = vmatprep.subr.bf16.mxu0 %v2601_v12  ;;  %475 = vmatprep.subr.bf16.mxu1 %v2601_v12  ;;  %v2854_v56 = vld [vmem:[%s3569_s3 + $0x30] ss:$8 sps:$4 sm:$0xff]   ;;  %v2862_v57 = vld [vmem:[%s3569_s3 + $0x154] ss:$8 sps:$4 sm:$0xff]   ;;  %v2872_v59 = vld [vmem:[%s3569_s3 + $0x24] ss:$8 sps:$4 sm:$0xff]  }
  0x15   :  { %v2867_v58 = vld [vmem:[%s3569_s3 + $0x150] ss:$8 sps:$4 sm:$0xff]   ;;  %v2878_v60 = vld [vmem:[%s3569_s3 + $0x20] ss:$8 sps:$4 sm:$0xff]   ;;  %v2886_v61 = vld [vmem:[%s3569_s3 + $0x144] ss:$8 sps:$4 sm:$0xff]  }
  0x16   :  { %v2891_v62 = vld [vmem:[%s3569_s3 + $0x140] ss:$8 sps:$4 sm:$0xff]   ;;  %v2896_v63 = vld [vmem:[%s3569_s3 + $0x14] ss:$8 sps:$4 sm:$0xff]   ;;  %v2963_v10 = vld [vmem:[%s3569_s3 + $0x110] ss:$8 sps:$4 sm:$0xff]  }
  0x17   :  { %364 = vmatpush1.bf16.msra.mxu0 %v2610_v13  ;;  %476 = vmatpush1.bf16.msra.mxu1 %v2610_v13  ;;  %3618 = vst [vmem:[#allocation2_spill] sm:$0xff] %v2891_v62  ;;  %v2958_v9 = vld [vmem:[%s3569_s3 + $0x114] ss:$8 sps:$4 sm:$0xff]   ;;  %3625 = vst [vmem:[#allocation9_spill] sm:$0xff] %v2963_v10  ;;  %v3016_v19 = vld [vmem:[%s3569_s3 + $0xc0] ss:$8 sps:$4 sm:$0xff]  }
  0x18   :  { %365 = vmatprep.subr.bf16.mxu0 %v2617_v14  ;;  %477 = vmatprep.subr.bf16.mxu1 %v2617_v14  ;;  %3624 = vst [vmem:[#allocation8_spill] sm:$0xff] %v2958_v9  ;;  %3634 = vst [vmem:[#allocation18_spill] sm:$0xff] %v3016_v19 }
  0x1b   :  { %366 = vmatpush1.bf16.msra.mxu0 %v2624_v15  ;;  %478 = vmatpush1.bf16.msra.mxu1 %v2624_v15 }
  0x1c   :  { %367 = vmatprep.subr.bf16.mxu0 %v2631_v16  ;;  %479 = vmatprep.subr.bf16.mxu1 %v2631_v16 }
  0x1f   :  { %368 = vmatpush1.bf16.msra.mxu0 %v2638_v17  ;;  %480 = vmatpush1.bf16.msra.mxu1 %v2638_v17 }
  0x20   :  { %1992 = vmatprep.subr.msk.bf16.mxu0 %vm346_vm1, %v2643_v18  ;;  %2008 = vmatprep.subr.msk.bf16.mxu1 %vm346_vm1, %v2643_v18 }
  0x23   :  { %384 = vmatpush2.bf16.msra.mxu0 %v2657_v20  ;;  %496 = vmatpush2.bf16.msra.mxu1 %v2657_v20 }
  0x24   :  { %604 = vmatprep.subr.bf16.mxu0 %v2527_v0  ;;  %716 = vmatprep.subr.bf16.mxu1 %v2527_v0  ;;  %v2902_v0 = vld [vmem:[%s3569_s3 + $0x10] ss:$8 sps:$4 sm:$0xff]  }
  0x26   :  { %386 = vmatmul.mubr.bf16.vlgmr.msra.gmra.mxu0 %v2271_v21  ;;  %498 = vmatmul.mubr.bf16.vlgmr.msra.gmra.mxu1 %v2274_v22  ;;  %v3030_v21 = vld [vmem:[%s3569_s3 + $0x1e4] ss:$8 sps:$4 sm:$0xff]   ;;  %v3035_v22 = vld [vmem:[%s3569_s3 + $0x1e0] ss:$8 sps:$4 sm:$0xff]  }
  0x27   :  { %605 = vmatpush1.bf16.msra.mxu0 %v2532_v1  ;;  %717 = vmatpush1.bf16.msra.mxu1 %v2532_v1  ;;  %v2910_v1 = vld [vmem:[%s3569_s3 + $0x134] ss:$8 sps:$4 sm:$0xff]   ;;  %3636 = vst [vmem:[#allocation20_spill] sm:$0xff] %v3030_v21  ;;  %3637 = vst [vmem:[#allocation21_spill] sm:$0xff] %v3035_v22 }
  0x28   :  { %606 = vmatprep.subr.bf16.mxu0 %v2539_v2  ;;  %718 = vmatprep.subr.bf16.mxu1 %v2539_v2  ;;  %3619 = vst [vmem:[#allocation3_spill] sm:$0xff] %v2910_v1  ;;  %v2915_v2 = vld [vmem:[%s3569_s3 + $0x130] ss:$8 sps:$4 sm:$0xff]  }
  0x29   :  { %1994 = vmatprep.mubr.msk.bf16.mxu0 %vm336_vm0, %v2277_v23  ;;  %2010 = vmatprep.mubr.msk.bf16.mxu1 %vm336_vm0, %v2279_v24  ;;  %3620 = vst [vmem:[#allocation4_spill] sm:$0xff] %v2915_v2  ;;  %v3040_v23 = vld [vmem:[%s3569_s3 + $0xb4] ss:$8 sps:$4 sm:$0xff]   ;;  %v3046_v24 = vld [vmem:[%s3569_s3 + $0xb0] ss:$8 sps:$4 sm:$0xff]  }
  0x2a   :  { %3638 = vst [vmem:[#allocation22_spill] sm:$0xff] %v3040_v23  ;;  %3639 = vst [vmem:[#allocation23_spill] sm:$0xff] %v3046_v24 }
  0x2b   :  { %607 = vmatpush1.bf16.msra.mxu0 %v2546_v3  ;;  %719 = vmatpush1.bf16.msra.mxu1 %v2546_v3  ;;  %v2920_v3 = vld [vmem:[%s3569_s3 + $0x4] ss:$8 sps:$4 sm:$0xff]  }
  0x2c   :  { %608 = vmatprep.subr.bf16.mxu0 %v2553_v4  ;;  %720 = vmatprep.subr.bf16.mxu1 %v2553_v4  ;;  %v2926_v4 = vld [vmem:[%s3569_s3] ss:$8 sps:$4 sm:$0xff]  }
  0x2e   :  { %396 = vmatmul.mubr.bf16.gmra.mxu0 %v2281_v25  ;;  %508 = vmatmul.mubr.bf16.gmra.mxu1 %v2282_v26  ;;  %v3054_v25 = vld [vmem:[%s3569_s3 + $0x1d4] ss:$8 sps:$4 sm:$0xff]   ;;  %v3059_v26 = vld [vmem:[%s3569_s3 + $0x1d0] ss:$8 sps:$4 sm:$0xff]  }
  0x2f   :  { %609 = vmatpush1.bf16.msra.mxu0 %v2560_v5  ;;  %721 = vmatpush1.bf16.msra.mxu1 %v2560_v5  ;;  %v2934_v5 = vld [vmem:[%s3569_s3 + $0x124] ss:$8 sps:$4 sm:$0xff]   ;;  %3640 = vst [vmem:[#allocation24_spill] sm:$0xff] %v3054_v25  ;;  %3641 = vst [vmem:[#allocation25_spill] sm:$0xff] %v3059_v26 }
  0x30   :  { %610 = vmatprep.subr.bf16.mxu0 %v2567_v6  ;;  %722 = vmatprep.subr.bf16.mxu1 %v2567_v6  ;;  %3621 = vst [vmem:[#allocation5_spill] sm:$0xff] %v2934_v5  ;;  %v2939_v6 = vld [vmem:[%s3569_s3 + $0x120] ss:$8 sps:$4 sm:$0xff]  }
  0x31   :  { %1995 = vmatprep.mubr.msk.bf16.mxu0 %vm336_vm0, %v2283_v27  ;;  %2011 = vmatprep.mubr.msk.bf16.mxu1 %vm336_vm0, %v2285_v28  ;;  %3622 = vst [vmem:[#allocation6_spill] sm:$0xff] %v2939_v6  ;;  %v3064_v27 = vld [vmem:[%s3569_s3 + $0xa4] ss:$8 sps:$4 sm:$0xff]   ;;  %v3070_v28 = vld [vmem:[%s3569_s3 + $0xa0] ss:$8 sps:$4 sm:$0xff]  }
  0x32   :  { %3642 = vst [vmem:[#allocation26_spill] sm:$0xff] %v3064_v27  ;;  %3643 = vst [vmem:[#allocation27_spill] sm:$0xff] %v3070_v28 }
  0x33   :  { %611 = vmatpush1.bf16.msra.mxu0 %v2574_v7  ;;  %723 = vmatpush1.bf16.msra.mxu1 %v2574_v7  ;;  %v2944_v7 = vld [vmem:[%s3569_s3 + $0xf4] ss:$8 sps:$4 sm:$0xff]  }
  0x34   :  { %612 = vmatprep.subr.bf16.mxu0 %v2581_v8  ;;  %724 = vmatprep.subr.bf16.mxu1 %v2581_v8  ;;  %v2950_v8 = vld [vmem:[%s3569_s3 + $0xf0] ss:$8 sps:$4 sm:$0xff]  }
  0x35   :  { %3623 = vst [vmem:[#allocation7_spill] sm:$0xff] %v2950_v8 }
  0x36   :  { %406 = vmatmul.mubr.bf16.gmra.mxu0 %v2287_v29  ;;  %518 = vmatmul.mubr.bf16.gmra.mxu1 %v2288_v30  ;;  %v3078_v29 = vld [vmem:[%s3569_s3 + $0x1c4] ss:$8 sps:$4 sm:$0xff]   ;;  %v3083_v30 = vld [vmem:[%s3569_s3 + $0x1c0] ss:$8 sps:$4 sm:$0xff]  }
  0x37   :  { %613 = vmatpush1.bf16.msra.mxu0 %v2594_v11  ;;  %725 = vmatpush1.bf16.msra.mxu1 %v2594_v11  ;;  %v2968_v11 = vld [vmem:[%s3569_s3 + $0xe4] ss:$8 sps:$4 sm:$0xff]   ;;  %3644 = vst [vmem:[#allocation28_spill] sm:$0xff] %v3078_v29  ;;  %3645 = vst [vmem:[#allocation29_spill] sm:$0xff] %v3083_v30 }
  0x38   :  { %614 = vmatprep.subr.bf16.mxu0 %v2601_v12  ;;  %726 = vmatprep.subr.bf16.mxu1 %v2601_v12  ;;  %3626 = vst [vmem:[#allocation10_spill] sm:$0xff] %v2968_v11  ;;  %v2974_v12 = vld [vmem:[%s3569_s3 + $0xe0] ss:$8 sps:$4 sm:$0xff]  }
  0x39   :  { %2026 = vmatprep.mubr.msk.bf16.mxu0 %vm336_vm0, %v2291_v31  ;;  %2042 = vmatprep.mubr.msk.bf16.mxu1 %vm336_vm0, %v2294_v32  ;;  %3627 = vst [vmem:[#allocation11_spill] sm:$0xff] %v2974_v12  ;;  %v3088_v31 = vld [vmem:[%s3569_s3 + $0x94] ss:$8 sps:$4 sm:$0xff]   ;;  %v3094_v32 = vld [vmem:[%s3569_s3 + $0x90] ss:$8 sps:$4 sm:$0xff]  }
  0x3a   :  { %3646 = vst [vmem:[#allocation30_spill] sm:$0xff] %v3088_v31  ;;  %3647 = vst [vmem:[#allocation31_spill] sm:$0xff] %v3094_v32 }
  0x3b   :  { %615 = vmatpush1.bf16.msra.mxu0 %v2610_v13  ;;  %727 = vmatpush1.bf16.msra.mxu1 %v2610_v13  ;;  %v2982_v13 = vld [vmem:[%s3569_s3 + $0x104] ss:$8 sps:$4 sm:$0xff]  }
  0x3c   :  { %616 = vmatprep.subr.bf16.mxu0 %v2617_v14  ;;  %728 = vmatprep.subr.bf16.mxu1 %v2617_v14  ;;  %3628 = vst [vmem:[#allocation12_spill] sm:$0xff] %v2982_v13  ;;  %v2987_v14 = vld [vmem:[%s3569_s3 + $0x100] ss:$8 sps:$4 sm:$0xff]  }
  0x3d   :  { %3629 = vst [vmem:[#allocation13_spill] sm:$0xff] %v2987_v14 }
  0x3f   :  { %617 = vmatpush1.bf16.msra.mxu0 %v2624_v15  ;;  %729 = vmatpush1.bf16.msra.mxu1 %v2624_v15  ;;  %v2992_v15 = vld [vmem:[%s3569_s3 + $0xd4] ss:$8 sps:$4 sm:$0xff]  }
  0x40   :  { %618 = vmatprep.subr.bf16.mxu0 %v2631_v16  ;;  %730 = vmatprep.subr.bf16.mxu1 %v2631_v16  ;;  %3630 = vst [vmem:[#allocation14_spill] sm:$0xff] %v2992_v15  ;;  %v2998_v16 = vld [vmem:[%s3569_s3 + $0xd0] ss:$8 sps:$4 sm:$0xff]  }
  0x41   :  { %3631 = vst [vmem:[#allocation15_spill] sm:$0xff] %v2998_v16 }
  0x43   :  { %619 = vmatpush1.bf16.msra.mxu0 %v2638_v17  ;;  %731 = vmatpush1.bf16.msra.mxu1 %v2638_v17  ;;  %v3006_v17 = vld [vmem:[%s3569_s3 + $0x1f4] ss:$8 sps:$4 sm:$0xff]  }
  0x44   :  { %2025 = vmatprep.subr.msk.bf16.mxu0 %vm346_vm1, %v2643_v18  ;;  %2041 = vmatprep.subr.msk.bf16.mxu1 %vm346_vm1, %v2643_v18  ;;  %3632 = vst [vmem:[#allocation16_spill] sm:$0xff] %v3006_v17  ;;  %v3011_v18 = vld [vmem:[%s3569_s3 + $0x1f0] ss:$8 sps:$4 sm:$0xff]  }
  0x45   :  { %3633 = vst [vmem:[#allocation17_spill] sm:$0xff] %v3011_v18 }
  0x47   :  { %635 = vmatpush2.bf16.msra.mxu0 %v2657_v20  ;;  %747 = vmatpush2.bf16.msra.mxu1 %v2657_v20  ;;  %v3021_v20 = vld [vmem:[%s3569_s3 + $0xc4] ss:$8 sps:$4 sm:$0xff]  }
  0x48   :  { %1227 = vmatprep.subr.bf16.mxu0 %v2742_v33  ;;  %1280 = vmatprep.subr.bf16.mxu1 %v2814_v49  ;;  %3635 = vst [vmem:[#allocation19_spill] sm:$0xff] %v3021_v20 }
  0x4a   :  { %637 = vmatmul.mubr.bf16.vlgmr.msra.gmra.mxu0 %v2289_v34  ;;  %749 = vmatmul.mubr.bf16.vlgmr.msra.gmra.mxu1 %v2292_v35  ;;  %v3102_v34 = vld [vmem:[%s3569_s3 + $0x1b4] ss:$8 sps:$4 sm:$0xff]   ;;  %v3107_v35 = vld [vmem:[%s3569_s3 + $0x1b0] ss:$8 sps:$4 sm:$0xff]  }
  0x4b   :  { %2027 = vmatprep.mubr.msk.bf16.mxu0 %vm336_vm0, %v2295_v36  ;;  %2043 = vmatprep.mubr.msk.bf16.mxu1 %vm336_vm0, %v2297_v37  ;;  %3648 = vst [vmem:[#allocation32_spill] sm:$0xff] %v3102_v34  ;;  %3649 = vst [vmem:[#allocation33_spill] sm:$0xff] %v3107_v35  ;;  %v3112_v36 = vld [vmem:[%s3569_s3 + $0x84] ss:$8 sps:$4 sm:$0xff]   ;;  %v3118_v37 = vld [vmem:[%s3569_s3 + $0x80] ss:$8 sps:$4 sm:$0xff]  }
  0x4c   :  { %1228 = vmatpush1.bf16.msra.mxu0 %v2761_v38  ;;  %1281 = vmatpush1.bf16.msra.mxu1 %v2819_v50  ;;  %3650 = vst [vmem:[#allocation34_spill] sm:$0xff] %v3112_v36  ;;  %3651 = vst [vmem:[#allocation35_spill] sm:$0xff] %v3118_v37 }
  0x4d   :  { %1229 = vmatprep.subr.bf16.mxu0 %v2767_v39  ;;  %1282 = vmatprep.subr.bf16.mxu1 %v2838_v53 }
  0x50   :  { %1230 = vmatpush1.bf16.msra.mxu0 %v2775_v40  ;;  %1283 = vmatpush1.bf16.msra.mxu1 %v2843_v54 }
  0x51   :  { %1231 = vmatprep.subr.bf16.mxu0 %v2781_v41  ;;  %1284 = vmatprep.subr.bf16.mxu1 %v2862_v57 }
  0x52   :  { %647 = vmatmul.mubr.bf16.gmra.mxu0 %v2299_v42  ;;  %759 = vmatmul.mubr.bf16.gmra.mxu1 %v2300_v43  ;;  %v3126_v42 = vld [vmem:[%s3569_s3 + $0x1a4] ss:$8 sps:$4 sm:$0xff]   ;;  %v3131_v43 = vld [vmem:[%s3569_s3 + $0x1a0] ss:$8 sps:$4 sm:$0xff]  }
  0x53   :  { %2028 = vmatprep.mubr.msk.bf16.mxu0 %vm336_vm0, %v2301_v44  ;;  %2044 = vmatprep.mubr.msk.bf16.mxu1 %vm336_vm0, %v2303_v45  ;;  %3652 = vst [vmem:[#allocation36_spill] sm:$0xff] %v3126_v42  ;;  %3653 = vst [vmem:[#allocation37_spill] sm:$0xff] %v3131_v43  ;;  %v3136_v44 = vld [vmem:[%s3569_s3 + $0x274] ss:$8 sps:$4 sm:$0xff]  }
  0x54   :  { %1232 = vmatpush1.bf16.msra.mxu0 %v2799_v46  ;;  %1285 = vmatpush1.bf16.msra.mxu1 %v2867_v58  ;;  %3654 = vst [vmem:[#allocation38_spill] sm:$0xff] %v3136_v44  ;;  %v3144_v45 = vld [vmem:[%s3569_s3 + $0x194] ss:$8 sps:$4 sm:$0xff]  }
  0x55   :  { %1233 = vmatprep.subr.bf16.mxu0 %v2824_v51  ;;  %1286 = vmatprep.subr.bf16.mxu1 %v2886_v61  ;;  %3655 = vst [vmem:[#allocation39_spill] sm:$0xff] %v3144_v45 }
  0x58   :  { %1234 = vmatpush1.bf16.msra.mxu0 %v2830_v52  ;;  %1287 = vmatpush1.bf16.msra.mxu1 %v2891_v62 }
  0x59   :  { %1235 = vmatprep.subr.bf16.mxu0 %v2848_v55  ;;  %1288 = vmatprep.subr.bf16.mxu1 %v2910_v1 }
  0x5a   :  { %657 = vmatmul.mubr.bf16.gmra.mxu0 %v2305_v47  ;;  %769 = vmatmul.mubr.bf16.gmra.mxu1 %v2306_v48  ;;  %v3149_v47 = vld [vmem:[%s3569_s3 + $0x190] ss:$8 sps:$4 sm:$0xff]   ;;  %v3156_v48 = vld [vmem:[%s3569_s3 + $0x184] ss:$8 sps:$4 sm:$0xff]  }
  0x5b   :  { %3656 = vst [vmem:[#allocation40_spill] sm:$0xff] %v3149_v47  ;;  %3657 = vst [vmem:[#allocation41_spill] sm:$0xff] %v3156_v48 }
  0x5c   :  { %1236 = vmatpush1.bf16.msra.mxu0 %v2854_v56  ;;  %1289 = vmatpush1.bf16.msra.mxu1 %v2915_v2 }
  0x5d   :  { %1237 = vmatprep.subr.bf16.mxu0 %v2872_v59  ;;  %1290 = vmatprep.subr.bf16.mxu1 %v2934_v5 }
  0x60   :  { %1238 = vmatpush1.bf16.msra.mxu0 %v2878_v60  ;;  %1291 = vmatpush1.bf16.msra.mxu1 %v2939_v6 }
  0x61   :  { %1239 = vmatprep.subr.bf16.mxu0 %v2896_v63  ;;  %1292 = vmatprep.subr.bf16.mxu1 %v2958_v9 }
  0x64   :  { %1240 = vmatpush1.bf16.msra.mxu0 %v2902_v0  ;;  %1293 = vmatpush1.bf16.msra.mxu1 %v2963_v10 }
  0x65   :  { %1241 = vmatprep.subr.bf16.mxu0 %v2920_v3  ;;  %1294 = vmatprep.subr.bf16.mxu1 %v2982_v13 }
  0x68   :  { %1242 = vmatpush1.bf16.msra.mxu0 %v2926_v4  ;;  %1295 = vmatpush1.bf16.msra.mxu1 %v2987_v14 }
  0x69   :  { %1243 = vmatprep.subr.bf16.mxu0 %v2944_v7  ;;  %1296 = vmatprep.subr.bf16.mxu1 %v3006_v17 }
  0x6c   :  { %1244 = vmatpush2.bf16.msra.mxu0 %v2950_v8  ;;  %1297 = vmatpush2.bf16.msra.mxu1 %v3011_v18 }
  0x6d   :  { %1245 = vmatprep.subr.bf16.mxu0 %v2968_v11  ;;  %1298 = vmatprep.subr.bf16.mxu1 %v3030_v21 }
  0x70   :  { %1246 = vmatpush2.bf16.msra.mxu0 %v2974_v12  ;;  %1299 = vmatpush2.bf16.msra.mxu1 %v3035_v22 }
  0x71   :  { %1247 = vmatprep.subr.bf16.mxu0 %v2992_v15  ;;  %1300 = vmatprep.subr.bf16.mxu1 %v3054_v25 }
  0x74   :  { %1248 = vmatpush2.bf16.msra.mxu0 %v2998_v16  ;;  %1301 = vmatpush2.bf16.msra.mxu1 %v3059_v26 }
  0x75   :  { %1249 = vmatprep.subr.bf16.mxu0 %v3021_v20  ;;  %1302 = vmatprep.subr.bf16.mxu1 %v3078_v29 }
  0x78   :  { %1250 = vmatpush2.bf16.msra.mxu0 %v3016_v19  ;;  %1303 = vmatpush2.bf16.msra.mxu1 %v3083_v30 }
  0x79   :  { %1251 = vmatprep.subr.bf16.mxu0 %v3040_v23  ;;  %1304 = vmatprep.subr.bf16.mxu1 %v3102_v34 }
  0x7c   :  { %1252 = vmatpush2.bf16.msra.mxu0 %v3046_v24  ;;  %1305 = vmatpush2.bf16.msra.mxu1 %v3107_v35 }
  0x7d   :  { %1253 = vmatprep.subr.bf16.mxu0 %v3064_v27  ;;  %1306 = vmatprep.subr.bf16.mxu1 %v3126_v42 }
  0x80   :  { %1254 = vmatpush2.bf16.msra.mxu0 %v3070_v28  ;;  %1307 = vmatpush2.bf16.msra.mxu1 %v3131_v43  ;;  %v3161_v43 = vld [vmem:[%s3569_s3 + $0x180] ss:$8 sps:$4 sm:$0xff]  }
  0x81   :  { %1255 = vmatprep.subr.bf16.mxu0 %v3088_v31  ;;  %1308 = vmatprep.subr.bf16.mxu1 %v3144_v45  ;;  %3658 = vst [vmem:[#allocation42_spill] sm:$0xff] %v3161_v43 }
  0x84   :  { %1256 = vmatpush2.bf16.msra.mxu0 %v3094_v32  ;;  %1309 = vmatpush2.bf16.msra.mxu1 %v3149_v47 }
  0x85   :  { %1257 = vmatprep.subr.bf16.mxu0 %v3112_v36  ;;  %1310 = vmatprep.subr.bf16.mxu1 %v3156_v48 }
  0x88   :  { %1258 = vmatpush2.bf16.msra.mxu0 %v3118_v37  ;;  %1311 = vmatpush2.bf16.msra.mxu1 %v3161_v43 }
  0x89   :  { %1333 = vmatprep.subr.bf16.mxu0 %v3136_v44  ;;  %1390 = vmatprep.subr.bf16.mxu1 %v2742_v33 }
  0xe6   :  { %v387_v42 = vpop.f32.mrf.mxu0  ;;  %v499_v45 = vpop.f32.mrf.mxu1 }
  0xe8   :  { %v389_v35 = vpop.f32.mrf.mxu0  ;;  %v501_v47 = vpop.f32.mrf.mxu1 }
  0xe9   :  { %v416_v19 = vmax.f32 %v387_v42, %v389_v35  ;;  %v528_v9 = vmax.f32 %v499_v45, %v501_v47 }
  0xea   :  { %v391_v34 = vpop.f32.mrf.mxu0  ;;  %v503_v30 = vpop.f32.mrf.mxu1 }
  0xec   :  { %v393_v29 = vpop.f32.mrf.mxu0  ;;  %v505_v44 = vpop.f32.mrf.mxu1 }
  0xed   :  { %v417_v27 = vmax.f32 %v391_v34, %v393_v29  ;;  %v529_v14 = vmax.f32 %v503_v30, %v505_v44  ;;  %v3181_v29 = vld [vmem:[%s3570_s2] ss:$0 sm:$0xff]  ;;  %v534_v30 = vmax.f32 %v416_v19, %v528_v9 }
  0xee   :  { %v397_v26 = vpop.f32.mrf.mxu0  ;;  %v509_v37 = vpop.f32.mrf.mxu1 }
  0xef   :  { %v535_v20 = vmax.f32 %v417_v27, %v529_v14 }
  0xf0   :  { %v399_v25 = vpop.f32.mrf.mxu0  ;;  %v511_v36 = vpop.f32.mrf.mxu1 }
  0xf1   :  { %v418_v6 = vmax.f32 %v397_v26, %v399_v25  ;;  %v530_v16 = vmax.f32 %v509_v37, %v511_v36  ;;  %v547_v35 = vadd.f32 %v3181_v29, %v535_v20 }
  0xf2   :  { %v401_v22 = vpop.f32.mrf.mxu0  ;;  %v513_v32 = vpop.f32.mrf.mxu1 }
  0xf3   :  { %v536_v14 = vmax.f32 %v418_v6, %v530_v16 }
  0xf4   :  { %v403_v21 = vpop.f32.mrf.mxu0  ;;  %v515_v48 = vpop.f32.mrf.mxu1 }
  0xf5   :  { %v419_v2 = vmax.f32 %v401_v22, %v403_v21  ;;  %v531_v12 = vmax.f32 %v513_v32, %v515_v48  ;;  %v553_v32 = vmax.f32 %v547_v35, 0.0  ;;  %v548_v37 = vadd.f32 %v3181_v29, %v536_v14 }
  0xf6   :  { %v3166_v31 = vpop.f32.mrf.mxu0  ;;  %v3168_v43 = vpop.f32.mrf.mxu1 }
  0xf7   :  { %v537_v27 = vmax.f32 %v419_v2, %v531_v12 }
  0xf8   :  { %v3170_v33 = vpop.f32.mrf.mxu0  ;;  %v3172_v18 = vpop.f32.mrf.mxu1 }
  0xfa   :  { %v3174_v28 = vpop.f32.mrf.mxu0  ;;  %v3176_v17 = vpop.f32.mrf.mxu1 }
  0xfc   :  { %v413_v24 = vpop.f32.mrf.mxu0  ;;  %v525_v13 = vpop.f32.mrf.mxu1 }
  0xfd   :  { %v421_v12 = vmax.f32 %v3174_v28, %v413_v24  ;;  %v533_v19 = vmax.f32 %v3176_v17, %v525_v13  ;;  %v554_v13 = vmax.f32 %v548_v37, 0.0 }
  0xff   :  { %v539_v28 = vmax.f32 %v421_v12, %v533_v19 }
 0x10a   :  { %v638_v23 = vpop.f32.mrf.mxu0  ;;  %v750_v10 = vpop.f32.mrf.mxu1 }
 0x10c   :  { %v640_v5 = vpop.f32.mrf.mxu0  ;;  %v752_v15 = vpop.f32.mrf.mxu1 }
 0x10d   :  { %v667_v1 = vmax.f32 %v638_v23, %v640_v5  ;;  %v779_v11 = vmax.f32 %v750_v10, %v752_v15  ;;  %v546_v10 = vadd.f32 %v3181_v29, %v534_v30 }
 0x10e   :  { %v642_v62 = vpop.f32.mrf.mxu0  ;;  %v754_v8 = vpop.f32.mrf.mxu1 }
 0x10f   :  { %v785_v34 = vmax.f32 %v667_v1, %v779_v11  ;;  %v549_v11 = vadd.f32 %v3181_v29, %v537_v27  ;;  %v552_v44 = vmax.f32 %v546_v10, 0.0 }
 0x110   :  { %v644_v25 = vpop.f32.mrf.mxu0  ;;  %v756_v26 = vpop.f32.mrf.mxu1 }
 0x111   :  { %v668_v36 = vmax.f32 %v642_v62, %v644_v25  ;;  %v780_v21 = vmax.f32 %v754_v8, %v756_v26  ;;  %v791_v15 = vadd.f32 %v3181_v29, %v785_v34  ;;  %v420_v62 = vmax.f32 %v3166_v31, %v3170_v33  ;;  %v3207_v26 = vld [vmem:[%s3569_s3 + $0x264] ss:$8 sps:$4 sm:$0xff]  }
 0x112   :  { %v648_v22 = vpop.f32.mrf.mxu0  ;;  %v760_v5 = vpop.f32.mrf.mxu1  ;;  %v532_v8 = vmax.f32 %v3168_v43, %v3172_v18  ;;  %v3195_v35 = vpack.c.bf16 %v553_v32, %v552_v44  ;;  %v3202_v18 = vld [vmem:[%s3569_s3 + $0x270] ss:$8 sps:$4 sm:$0xff]   ;;  %v555_v17 = vmax.f32 %v549_v11, 0.0 }
 0x113   :  { %v786_v23 = vmax.f32 %v668_v36, %v780_v21  ;;  %v797_v45 = vmax.f32 %v791_v15, 0.0 }
 0x114   :  { %v650_v9 = vpop.f32.mrf.mxu0  ;;  %v762_v1 = vpop.f32.mrf.mxu1  ;;  %v538_v24 = vmax.f32 %v420_v62, %v532_v8  ;;  %v3219_v32 = vpack.c.bf16 %v555_v17, %v554_v13  ;;  %v810_v17 = vrot.slane %v3195_v35, 4 }
 0x115   :  { %v792_v6 = vadd.f32 %v3181_v29, %v786_v23  ;;  %v669_v16 = vmax.f32 %v648_v22, %v650_v9  ;;  %v781_v2 = vmax.f32 %v760_v5, %v762_v1  ;;  %v3217_v23 = vld [vmem:[%s3569_s3 + $0x260] ss:$8 sps:$4 sm:$0xff]   ;;  %v551_v9 = vadd.f32 %v3181_v29, %v539_v28 }
 0x116   :  { %v652_v20 = vpop.f32.mrf.mxu0  ;;  %v764_v42 = vpop.f32.mrf.mxu1  ;;  %v550_v37 = vadd.f32 %v3181_v29, %v538_v24 }
 0x117   :  { %v798_v47 = vmax.f32 %v792_v6, 0.0  ;;  %v787_v48 = vmax.f32 %v669_v16, %v781_v2  ;;  %v3227_v6 = vld [vmem:[%s3569_s3 + $0x254] ss:$8 sps:$4 sm:$0xff]  }
 0x118   :  { %v654_v30 = vpop.f32.mrf.mxu0  ;;  %v766_v34 = vpop.f32.mrf.mxu1 }
 0x119   :  { %v670_v14 = vmax.f32 %v652_v20, %v654_v30  ;;  %v782_v25 = vmax.f32 %v764_v42, %v766_v34  ;;  %v3197_v31 = vpack.c.bf16 %v798_v47, %v797_v45  ;;  %v793_v27 = vadd.f32 %v3181_v29, %v787_v48  ;;  %v3236_v45 = vld [vmem:[%s3569_s3 + $0x250] ss:$8 sps:$4 sm:$0xff]   ;;  %v3243_v34 = vld [vmem:[%s3569_s3 + $0x244] ss:$8 sps:$4 sm:$0xff]  }
 0x11a   :  { %v658_v43 = vpop.f32.mrf.mxu0  ;;  %v770_v33 = vpop.f32.mrf.mxu1  ;;  %v556_v47 = vmax.f32 %v550_v37, 0.0  ;;  %v557_v48 = vmax.f32 %v551_v9, 0.0  ;;  %v811_v30 = vrot.slane %v3219_v32, 4  ;;  %v3298_v37 = vld [vmem:[%s3569_s3 + $0x220] ss:$8 sps:$4 sm:$0xff]  }
 0x11b   :  { %v788_v36 = vmax.f32 %v670_v14, %v782_v25  ;;  %1259 = vmatprep.mubr.bf16.mxu0 %v3197_v31  ;;  %v799_v16 = vmax.f32 %v793_v27, 0.0  ;;  %v820_v25 = vrot.slane %v3197_v31, 4  ;;  %v2471_v27 = vmov 0  }
 0x11c   :  { %v660_v21 = vpop.f32.mrf.mxu0  ;;  %v772_v22 = vpop.f32.mrf.mxu1  ;;  %1260 = vmatmul.mubr.bf16.vlgmr.msra.gmra.mxu0 %v3195_v35  ;;  %v812_v35 = vsel %vm809_vm2, %v810_v17, %v811_v30  ;;  %v3693_v17 = vld [vmem:[#allocation33_spill] sm:$0xff] }
 0x11d   :  { %v794_v5 = vadd.f32 %v3181_v29, %v788_v36  ;;  %v671_v10 = vmax.f32 %v658_v43, %v660_v21  ;;  %v783_v15 = vmax.f32 %v770_v33, %v772_v22  ;;  %1334 = vmatpush1.bf16.msra.mxu0 %v3202_v18  ;;  %v3258_v33 = vld [vmem:[%s3569_s3 + $0x240] ss:$8 sps:$4 sm:$0xff]   ;;  %v3261_v36 = vpack.c.bf16 %v557_v48, %v556_v47  ;;  %v3688_v48 = vld [vmem:[#allocation25_spill] sm:$0xff] }
 0x11e   :  { %v662_v1 = vpop.f32.mrf.mxu0  ;;  %v774_v11 = vpop.f32.mrf.mxu1  ;;  %1335 = vmatprep.subr.bf16.mxu0 %v3207_v26  ;;  %v3687_v47 = vld [vmem:[#allocation35_spill] sm:$0xff] }
 0x11f   :  { %v800_v2 = vmax.f32 %v794_v5, 0.0  ;;  %v789_v62 = vmax.f32 %v671_v10, %v783_v15  ;;  %v3279_v5 = vld [vmem:[%s3569_s3 + $0x230] ss:$8 sps:$4 sm:$0xff]   ;;  %v813_v10 = vrot.slane %v3261_v36, 4  ;;  %v3286_v15 = vld [vmem:[%s3569_s3 + $0x224] ss:$8 sps:$4 sm:$0xff]  }
 0x120   :  { %v664_v8 = vpop.f32.mrf.mxu0  ;;  %v776_v12 = vpop.f32.mrf.mxu1 }
 0x121   :  { %v3229_v19 = vpack.c.bf16 %v800_v2, %v799_v16  ;;  %v795_v20 = vadd.f32 %v3181_v29, %v789_v62  ;;  %v672_v42 = vmax.f32 %v662_v1, %v664_v8  ;;  %v784_v44 = vmax.f32 %v774_v11, %v776_v12  ;;  %1336 = vmatpush1.bf16.msra.mxu0 %v3217_v23  ;;  %v3323_v1 = vld [vmem:[%s3569_s3 + $0x204] ss:$8 sps:$4 sm:$0xff]   ;;  %v3678_v11 = vld [vmem:[#allocation16_spill] sm:$0xff]  ;;  %v3680_v2 = vld [vmem:[#allocation17_spill] sm:$0xff] }
 0x122   :  { %1337 = vmatprep.subr.bf16.mxu0 %v3227_v6  ;;  %v3302_v9 = vsel %vm809_vm2, %v811_v30, %v813_v10  ;;  %v3679_v16 = vld [vmem:[#allocation27_spill] sm:$0xff]  ;;  %v3681_v62 = vld [vmem:[#allocation30_spill] sm:$0xff]  ;;  %v3682_v8 = vld [vmem:[#allocation20_spill] sm:$0xff] }
 0x123   :  { %v790_v14 = vmax.f32 %v672_v42, %v784_v44  ;;  %1269 = vmatprep.mubr.bf16.mxu0 %v3229_v19  ;;  %v821_v13 = vrot.slane %v3229_v19, 4  ;;  %v801_v24 = vmax.f32 %v795_v20, 0.0  ;;  %v3683_v12 = vld [vmem:[#allocation31_spill] sm:$0xff]  ;;  %v3684_v20 = vld [vmem:[#allocation21_spill] sm:$0xff]  ;;  %v3685_v42 = vld [vmem:[#allocation34_spill] sm:$0xff] }
 0x124   :  { %1270 = vmatmul.mubr.bf16.gmra.mxu0 %v3219_v32  ;;  %v3686_v44 = vld [vmem:[#allocation24_spill] sm:$0xff]  ;;  %v3689_v30 = vld [vmem:[#allocation38_spill] sm:$0xff]  ;;  %v2440_v10 = vld [vmem:[%s3571_s5 + $0xe8] sm:$0xff]  }
 0x125   :  { %v796_v28 = vadd.f32 %v3181_v29, %v790_v14  ;;  %1338 = vmatpush1.bf16.msra.mxu0 %v3236_v45  ;;  %v3253_v43 = vsel %vm809_vm2, %v820_v25, %v821_v13  ;;  %1365 = vmatprep.mubr.bf16.mxu0 %v2471_v27  ;;  %v3269_v29 = vld [vmem:[%s3569_s3 + $0x234] ss:$8 sps:$4 sm:$0xff]  }
 0x126   :  { %1312 = vmatprep.mubr.bf16.mxu1 %v3253_v43  ;;  %1339 = vmatprep.subr.bf16.mxu0 %v3243_v34  ;;  %v3690_v14 = vld [vmem:[#allocation28_spill] sm:$0xff]  ;;  %v3691_v25 = vld [vmem:[#allocation29_spill] sm:$0xff] }
 0x127   :  { %v802_v21 = vmax.f32 %v796_v28, 0.0  ;;  %1313 = vmatmul.mubr.bf16.vlgmr.msra.gmra.mxu1 %v812_v35  ;;  %v2429_v28 = vld [vmem:[%s3571_s5 + $0x70] sm:$0xff]  }
 0x128   :  { %1391 = vmatpush1.bf16.msra.mxu1 %v2761_v38 }
 0x129   :  { %v3272_v22 = vpack.c.bf16 %v802_v21, %v801_v24  ;;  %1340 = vmatpush1.bf16.msra.mxu0 %v3258_v33  ;;  %1392 = vmatprep.subr.bf16.mxu1 %v2767_v39  ;;  %v3694_v24 = vld [vmem:[#allocation36_spill] sm:$0xff]  ;;  %v2437_v21 = vld [vmem:[%s3571_s5 + $0x20] sm:$0xff]  }
 0x12a   :  { %1341 = vmatprep.subr.bf16.mxu0 %v3269_v29 }
 0x12b   :  { %v823_v38 = vrot.slane %v3272_v22, 4 }
 0x12c   :  { %1393 = vmatpush1.bf16.msra.mxu1 %v2775_v40  ;;  %v3308_v40 = vld [vmem:[%s3569_s3 + $0x214] ss:$8 sps:$4 sm:$0xff]  }
 0x12d   :  { %1342 = vmatpush1.bf16.msra.mxu0 %v3279_v5  ;;  %v3292_v39 = vsel %vm809_vm2, %v821_v13, %v823_v38  ;;  %1394 = vmatprep.subr.bf16.mxu1 %v2781_v41  ;;  %v3317_v41 = vld [vmem:[%s3569_s3 + $0x210] ss:$8 sps:$4 sm:$0xff]   ;;  %v2442_v38 = vld [vmem:[%s3571_s5 + $0xa8] sm:$0xff]  }
 0x12e   :  { %1322 = vmatprep.mubr.bf16.mxu1 %v3292_v39  ;;  %1343 = vmatprep.subr.bf16.mxu0 %v3286_v15  ;;  %v3692_v13 = vld [vmem:[#allocation32_spill] sm:$0xff] }
 0x12f   :  { %1323 = vmatmul.mubr.bf16.gmra.mxu1 %v3302_v9 }
 0x130   :  { %1395 = vmatpush1.bf16.msra.mxu1 %v2799_v46  ;;  %1422 = vmatprep.mubr.bf16.mxu1 %v812_v35  ;;  %v3331_v46 = vld [vmem:[%s3569_s3 + $0x200] ss:$8 sps:$4 sm:$0xff]  }
 0x131   :  { %1344 = vmatpush1.bf16.msra.mxu0 %v3298_v37  ;;  %1396 = vmatprep.subr.bf16.mxu1 %v2824_v51  ;;  %v3661_v51 = vld [vmem:[#allocation10_spill] sm:$0xff] }
 0x132   :  { %1345 = vmatprep.subr.bf16.mxu0 %v3308_v40  ;;  %v2435_v35 = vld [vmem:[%s3571_s5 + $0x60] sm:$0xff]  }
 0x134   :  { %1397 = vmatpush1.bf16.msra.mxu1 %v2830_v52  ;;  %v3662_v52 = vld [vmem:[#allocation3_spill] sm:$0xff] }
 0x135   :  { %1346 = vmatpush1.bf16.msra.mxu0 %v3317_v41  ;;  %1398 = vmatprep.subr.bf16.mxu1 %v2848_v55  ;;  %v3665_v55 = vld [vmem:[#allocation14_spill] sm:$0xff] }
 0x136   :  { %1347 = vmatprep.subr.bf16.mxu0 %v3323_v1 }
 0x138   :  { %1399 = vmatpush1.bf16.msra.mxu1 %v2854_v56  ;;  %v3666_v56 = vld [vmem:[#allocation5_spill] sm:$0xff] }
 0x139   :  { %1348 = vmatpush1.bf16.msra.mxu0 %v3331_v46  ;;  %1400 = vmatprep.subr.bf16.mxu1 %v2872_v59  ;;  %v3669_v59 = vld [vmem:[#allocation19_spill] sm:$0xff] }
 0x13a   :  { %1443 = vmatprep.subr.bf16.mxu0 %v2814_v49  ;;  %v3659_v49 = vld [vmem:[#allocation7_spill] sm:$0xff] }
 0x13c   :  { %1366 = vmatmul.mubr.bf16.vlgmr.msra.gmra.mxu0 %v3219_v32  ;;  %1401 = vmatpush1.bf16.msra.mxu1 %v2878_v60  ;;  %v3670_v60 = vld [vmem:[#allocation8_spill] sm:$0xff] }
 0x13d   :  { %1444 = vmatpush1.bf16.msra.mxu0 %v2819_v50  ;;  %1402 = vmatprep.subr.bf16.mxu1 %v2896_v63  ;;  %v3660_v50 = vld [vmem:[#allocation2_spill] sm:$0xff]  ;;  %v3672_v63 = vld [vmem:[#allocation9_spill] sm:$0xff] }
 0x13e   :  { %1445 = vmatprep.subr.bf16.mxu0 %v2838_v53  ;;  %1375 = vmatprep.mubr.bf16.mxu0 %v2471_v27  ;;  %v3663_v53 = vld [vmem:[#allocation11_spill] sm:$0xff] }
 0x140   :  { %1403 = vmatpush1.bf16.msra.mxu1 %v2902_v0  ;;  %v3673_v0 = vld [vmem:[#allocation22_spill] sm:$0xff] }
 0x141   :  { %1446 = vmatpush1.bf16.msra.mxu0 %v2843_v54  ;;  %1404 = vmatprep.subr.bf16.mxu1 %v2920_v3  ;;  %v3664_v54 = vld [vmem:[#allocation4_spill] sm:$0xff] }
 0x142   :  { %1447 = vmatprep.subr.bf16.mxu0 %v2862_v57  ;;  %v3667_v57 = vld [vmem:[#allocation15_spill] sm:$0xff]  ;;  %v3674_v3 = vld [vmem:[#allocation12_spill] sm:$0xff] }
 0x144   :  { %1376 = vmatmul.mubr.bf16.gmra.mxu0 %v3261_v36  ;;  %1405 = vmatpush1.bf16.msra.mxu1 %v2926_v4  ;;  %v3675_v4 = vld [vmem:[#allocation23_spill] sm:$0xff] }
 0x145   :  { %1448 = vmatpush1.bf16.msra.mxu0 %v2867_v58  ;;  %1475 = vmatprep.mubr.bf16.mxu0 %v3219_v32  ;;  %v3668_v58 = vld [vmem:[#allocation6_spill] sm:$0xff] }
 0x146   :  { %1406 = vmatprep.subr.bf16.mxu1 %v2944_v7  ;;  %1449 = vmatprep.subr.bf16.mxu0 %v2886_v61  ;;  %v3671_v61 = vld [vmem:[#allocation18_spill] sm:$0xff]  ;;  %v3676_v7 = vld [vmem:[#allocation13_spill] sm:$0xff] }
 0x147   :  { %v3677_v32 = vld [vmem:[#allocation26_spill] sm:$0xff] }
 0x148   :  { %1407 = vmatpush2.bf16.msra.mxu1 %v3659_v49  ;;  %v2450_v49 = vld [vmem:[%s3571_s5 + $0x98] sm:$0xff]  }
 0x149   :  { %1450 = vmatpush1.bf16.msra.mxu0 %v3660_v50  ;;  %1408 = vmatprep.subr.bf16.mxu1 %v3661_v51  ;;  %v2451_v50 = vld [vmem:[%s3571_s5 + $0x40] sm:$0xff]   ;;  %v2452_v51 = vld [vmem:[%s3571_s5 + $0xd0] sm:$0xff]  }
 0x14a   :  { %1451 = vmatprep.subr.bf16.mxu0 %v3662_v52  ;;  %v2453_v52 = vld [vmem:[%s3571_s5] sm:$0xff]  }
 0x14c   :  { %1409 = vmatpush2.bf16.msra.mxu1 %v3663_v53  ;;  %v2454_v53 = vld [vmem:[%s3571_s5 + $0x90] sm:$0xff]  }
 0x14d   :  { %1452 = vmatpush1.bf16.msra.mxu0 %v3664_v54  ;;  %1410 = vmatprep.subr.bf16.mxu1 %v3665_v55  ;;  %v2455_v54 = vld [vmem:[%s3571_s5 + $0xc8] sm:$0xff]  }
 0x14e   :  { %1453 = vmatprep.subr.bf16.mxu0 %v3666_v56  ;;  %v2456_v55 = vld [vmem:[%s3571_s5 + $0x88] sm:$0xff]   ;;  %v2457_v56 = vld [vmem:[%s3571_s5 + $0xc0] sm:$0xff]  }
 0x150   :  { %1411 = vmatpush2.bf16.msra.mxu1 %v3667_v57  ;;  %v2458_v57 = vld [vmem:[%s3571_s5 + $0x80] sm:$0xff]  }
 0x151   :  { %1454 = vmatpush1.bf16.msra.mxu0 %v3668_v58  ;;  %1412 = vmatprep.subr.bf16.mxu1 %v3669_v59  ;;  %v2472_v58 = vmov 0.0  }
 0x152   :  { %1455 = vmatprep.subr.bf16.mxu0 %v3670_v60 }
 0x154   :  { %1413 = vmatpush2.bf16.msra.mxu1 %v3671_v61 }
 0x155   :  { %1456 = vmatpush1.bf16.msra.mxu0 %v3672_v63  ;;  %1414 = vmatprep.subr.bf16.mxu1 %v3673_v0 }
 0x156   :  { %1457 = vmatprep.subr.bf16.mxu0 %v3674_v3 }
 0x158   :  { %1415 = vmatpush2.bf16.msra.mxu1 %v3675_v4 }
 0x159   :  { %1458 = vmatpush1.bf16.msra.mxu0 %v3676_v7  ;;  %1416 = vmatprep.subr.bf16.mxu1 %v3677_v32 }
 0x15a   :  { %1459 = vmatprep.subr.bf16.mxu0 %v3678_v11 }
 0x15c   :  { %1417 = vmatpush2.bf16.msra.mxu1 %v3679_v16 }
 0x15d   :  { %1460 = vmatpush2.bf16.msra.mxu0 %v3680_v2  ;;  %1418 = vmatprep.subr.bf16.mxu1 %v3681_v62 }
 0x15e   :  { %1461 = vmatprep.subr.bf16.mxu0 %v3682_v8 }
 0x160   :  { %1419 = vmatpush2.bf16.msra.mxu1 %v3683_v12 }
 0x161   :  { %1462 = vmatpush2.bf16.msra.mxu0 %v3684_v20  ;;  %1420 = vmatprep.subr.bf16.mxu1 %v3685_v42 }
 0x162   :  { %1463 = vmatprep.subr.bf16.mxu0 %v3686_v44 }
 0x164   :  { %1421 = vmatpush2.bf16.msra.mxu1 %v3687_v47 }
 0x165   :  { %1464 = vmatpush2.bf16.msra.mxu0 %v3688_v48  ;;  %1496 = vmatprep.subr.bf16.mxu1 %v3689_v30 }
 0x166   :  { %1465 = vmatprep.subr.bf16.mxu0 %v3690_v14 }
 0x167   :  { %1423 = vmatmul.mubr.bf16.vlgmr.msra.gmra.mxu1 %v3197_v31  ;;  %v3695_v31 = vld [vmem:[#allocation37_spill] sm:$0xff] }
 0x168   :  { %1432 = vmatprep.mubr.bf16.mxu1 %v3302_v9  ;;  %1497 = vmatpush1.bf16.msra.mxu1 %v3202_v18  ;;  %v3696_v18 = vld [vmem:[#allocation39_spill] sm:$0xff]  ;;  %v2445_v9 = vld [vmem:[%s3571_s5 + $0x10] sm:$0xff]  }
 0x169   :  { %1466 = vmatpush2.bf16.msra.mxu0 %v3691_v25  ;;  %1498 = vmatprep.subr.bf16.mxu1 %v3207_v26  ;;  %v3697_v26 = vld [vmem:[#allocation40_spill] sm:$0xff] }
 0x16a   :  { %1467 = vmatprep.subr.bf16.mxu0 %v3692_v13 }
 0x16c   :  { %1499 = vmatpush1.bf16.msra.mxu1 %v3217_v23  ;;  %v3698_v23 = vld [vmem:[#allocation41_spill] sm:$0xff] }
 0x16d   :  { %1468 = vmatpush2.bf16.msra.mxu0 %v3693_v17  ;;  %1500 = vmatprep.subr.bf16.mxu1 %v3227_v6  ;;  %v3699_v6 = vld [vmem:[#allocation42_spill] sm:$0xff] }
 0x16e   :  { %1469 = vmatprep.subr.bf16.mxu0 %v3694_v24 }
 0x16f   :  { %1433 = vmatmul.mubr.bf16.gmra.mxu1 %v3229_v19 }
 0x170   :  { %1501 = vmatpush1.bf16.msra.mxu1 %v3236_v45  ;;  %1528 = vmatprep.mubr.bf16.mxu1 %v2471_v27  ;;  %v2427_v45 = vld [vmem:[%s3571_s5 + $0x78] sm:$0xff]  }
 0x171   :  { %1470 = vmatpush2.bf16.msra.mxu0 %v3695_v31  ;;  %1502 = vmatprep.subr.bf16.mxu1 %v3243_v34  ;;  %v2428_v34 = vld [vmem:[%s3571_s5 + $0x38] sm:$0xff]  }
 0x172   :  { %1471 = vmatprep.subr.bf16.mxu0 %v3696_v18 }
 0x174   :  { %1503 = vmatpush1.bf16.msra.mxu1 %v3258_v33  ;;  %v2432_v33 = vld [vmem:[%s3571_s5 + $0xf8] sm:$0xff]  }
 0x175   :  { %1472 = vmatpush2.bf16.msra.mxu0 %v3697_v26  ;;  %1504 = vmatprep.subr.bf16.mxu1 %v3269_v29  ;;  %v2436_v29 = vld [vmem:[%s3571_s5 + $0xf0] sm:$0xff]  }
 0x176   :  { %1473 = vmatprep.subr.bf16.mxu0 %v3698_v23 }
 0x178   :  { %1505 = vmatpush1.bf16.msra.mxu1 %v3279_v5  ;;  %v2439_v5 = vld [vmem:[%s3571_s5 + $0x58] sm:$0xff]  }
 0x179   :  { %1474 = vmatpush2.bf16.msra.mxu0 %v3699_v6  ;;  %1506 = vmatprep.subr.bf16.mxu1 %v3286_v15  ;;  %v2441_v15 = vld [vmem:[%s3571_s5 + $0x18] sm:$0xff]  }
 0x17a   :  { %2168 = vmatprep.subr.bf16.mxu0 %v2427_v45 }
 0x17c   :  { %1476 = vmatmul.mubr.bf16.vlgmr.msra.gmra.mxu0 %v3253_v43  ;;  %1507 = vmatpush1.bf16.msra.mxu1 %v3298_v37  ;;  %v2431_v43 = vld [vmem:[%s3571_s5 + $0x68] sm:$0xff]   ;;  %v2444_v37 = vld [vmem:[%s3571_s5 + $0xe0] sm:$0xff]  }
 0x17d   :  { %1485 = vmatprep.mubr.bf16.mxu0 %v3261_v36  ;;  %1508 = vmatprep.subr.bf16.mxu1 %v3308_v40  ;;  %v2434_v36 = vld [vmem:[%s3571_s5 + $0xb8] sm:$0xff]   ;;  %v2446_v40 = vld [vmem:[%s3571_s5 + $0xa0] sm:$0xff]  }
 0x17e   :  { %2169 = vmatpush3.bf16.msra.mxu0 %v2428_v34 }
 0x17f   :  { %2170 = vmatprep.subr.bf16.mxu0 %v2429_v28 }
 0x180   :  { %1509 = vmatpush1.bf16.msra.mxu1 %v3317_v41  ;;  %v2447_v41 = vld [vmem:[%s3571_s5 + $0x48] sm:$0xff]  }
 0x181   :  { %1510 = vmatprep.subr.bf16.mxu1 %v3323_v1  ;;  %v2448_v1 = vld [vmem:[%s3571_s5 + $0xd8] sm:$0xff]  }
 0x184   :  { %1486 = vmatmul.mubr.bf16.gmra.mxu0 %v3292_v39  ;;  %1511 = vmatpush1.bf16.msra.mxu1 %v3331_v46  ;;  %v2443_v39 = vld [vmem:[%s3571_s5 + $0x50] sm:$0xff]   ;;  %v2449_v46 = vld [vmem:[%s3571_s5 + $0x8] sm:$0xff]  }
 0x185   :  { %2190 = vmatprep.subr.bf16.mxu1 %v2432_v33 }
 0x187   :  { %1529 = vmatmul.mubr.bf16.vlgmr.msra.gmra.mxu1 %v3229_v19  ;;  %v2430_v19 = vld [vmem:[%s3571_s5 + $0x30] sm:$0xff]  }
 0x188   :  { %1538 = vmatprep.mubr.bf16.mxu1 %v2471_v27  ;;  %2171 = vmatpush3.bf16.msra.mxu0 %v2430_v19  ;;  %v2433_v27 = vld [vmem:[%s3571_s5 + $0x28] sm:$0xff]  }
 0x189   :  { %2172 = vmatprep.subr.bf16.mxu0 %v2431_v43  ;;  %2191 = vmatpush3.bf16.msra.mxu1 %v2434_v36 }
 0x18a   :  { %2192 = vmatprep.subr.bf16.mxu1 %v2436_v29 }
 0x18c   :  { %2173 = vmatpush3.bf16.msra.mxu0 %v2433_v27 }
 0x18d   :  { %2174 = vmatprep.subr.bf16.mxu0 %v2435_v35 }
 0x18f   :  { %1539 = vmatmul.mubr.bf16.gmra.mxu1 %v3272_v22  ;;  %v2438_v22 = vld [vmem:[%s3571_s5 + $0xb0] sm:$0xff]  }
 0x190   :  { %2175 = vmatpush3.bf16.msra.mxu0 %v2437_v21  ;;  %2193 = vmatpush3.bf16.msra.mxu1 %v2438_v22 }
 0x191   :  { %2176 = vmatprep.subr.bf16.mxu0 %v2439_v5  ;;  %2194 = vmatprep.subr.bf16.mxu1 %v2440_v10 }
 0x194   :  { %2177 = vmatpush3.bf16.msra.mxu0 %v2441_v15  ;;  %2195 = vmatpush3.bf16.msra.mxu1 %v2442_v38 }
 0x195   :  { %2178 = vmatprep.subr.bf16.mxu0 %v2443_v39  ;;  %2196 = vmatprep.subr.bf16.mxu1 %v2444_v37 }
 0x198   :  { %2179 = vmatpush3.bf16.msra.mxu0 %v2445_v9  ;;  %2197 = vmatpush3.bf16.msra.mxu1 %v2446_v40 }
 0x199   :  { %2180 = vmatprep.subr.bf16.mxu0 %v2447_v41  ;;  %2198 = vmatprep.subr.bf16.mxu1 %v2448_v1 }
 0x19c   :  { %2181 = vmatpush3.bf16.msra.mxu0 %v2449_v46  ;;  %2199 = vmatpush3.bf16.msra.mxu1 %v2450_v49 }
 0x19d   :  { %2182 = vmatprep.subr.bf16.mxu0 %v2451_v50  ;;  %2200 = vmatprep.subr.bf16.mxu1 %v2452_v51 }
 0x1a0   :  { %2183 = vmatpush3.bf16.msra.mxu0 %v2453_v52  ;;  %2201 = vmatpush3.bf16.msra.mxu1 %v2454_v53 }
 0x1a1   :  { %2202 = vmatprep.subr.bf16.mxu1 %v2455_v54  ;;  %2221 = vmatprep.subr.bf16.mxu0 %v2472_v58 }
 0x1a4   :  { %2203 = vmatpush3.bf16.msra.mxu1 %v2456_v55  ;;  %v2125_v55 = vld [vmem:[%s3573_s4] ss:$0 sm:$0xff] }
 0x1a5   :  { %2204 = vmatprep.subr.bf16.mxu1 %v2457_v56 }
 0x1a8   :  { %2205 = vmatpush3.bf16.msra.mxu1 %v2458_v57 }
 0x1dc   :  { %v1261_v59 = vpop.f32.mrf.mxu0 }
 0x1de   :  { %v1263_v60 = vpop.f32.mrf.mxu0 }
 0x1e0   :  { %v1265_v61 = vpop.f32.mrf.mxu0 }
 0x1e2   :  { %v1267_v0 = vpop.f32.mrf.mxu0 }
 0x1e4   :  { %v1271_v4 = vpop.f32.mrf.mxu0 }
 0x1e6   :  { %v1273_v32 = vpop.f32.mrf.mxu0 }
 0x1e7   :  { %v1314_v63 = vpop.f32.mrf.mxu1 }
 0x1e8   :  { %v3517_v16 = vpop.f32.mrf.mxu0  ;;  %v1315_v36 = vadd.f32 %v1314_v63, %v1261_v59 }
 0x1e9   :  { %v1316_v3 = vpop.f32.mrf.mxu1 }
 0x1ea   :  { %v1277_v62 = vpop.f32.mrf.mxu0  ;;  %v1317_v43 = vadd.f32 %v1316_v3, %v1263_v60 }
 0x1eb   :  { %v1318_v7 = vpop.f32.mrf.mxu1 }
 0x1ec   :  { %v1319_v9 = vadd.f32 %v1318_v7, %v1265_v61 }
 0x1ed   :  { %v1320_v11 = vpop.f32.mrf.mxu1 }
 0x1ee   :  { %v1321_v38 = vadd.f32 %v1320_v11, %v1267_v0 }
 0x1ef   :  { %v1324_v2 = vpop.f32.mrf.mxu1 }
 0x1f0   :  { %v1325_v60 = vadd.f32 %v1324_v2, %v1271_v4 }
 0x1f1   :  { %v1326_v12 = vpop.f32.mrf.mxu1 }
 0x1f2   :  { %v1327_v51 = vadd.f32 %v1326_v12, %v1273_v32 }
 0x1f3   :  { %v3519_v42 = vpop.f32.mrf.mxu1 }
 0x1f5   :  { %v1330_v47 = vpop.f32.mrf.mxu1 }
 0x1fc   :  { %v1367_v8 = vpop.f32.mrf.mxu0 }
 0x1fd   :  { %v1368_v5 = vadd.f32 %v1367_v8, %v1315_v36  ;;  %v1331_v8 = vadd.f32 %v1330_v47, %v1277_v62 }
 0x1fe   :  { %v1369_v20 = vpop.f32.mrf.mxu0 }
 0x1ff   :  { %v1370_v35 = vadd.f32 %v1369_v20, %v1317_v43 }
 0x200   :  { %v1371_v44 = vpop.f32.mrf.mxu0 }
 0x201   :  { %v1386_v40 = vmax.f32 %v1368_v5, %v1370_v35  ;;  %v1372_v54 = vadd.f32 %v1371_v44, %v1319_v9  ;;  %v2466_v9 = vld [vmem:[%s3572_s7] sm:$0xff]  }
 0x202   :  { %v1373_v30 = vpop.f32.mrf.mxu0 }
 0x203   :  { %v1374_v1 = vadd.f32 %v1373_v30, %v1321_v38  ;;  %v2463_v38 = vld [vmem:[%s3572_s7 + $0x18] sm:$0xff]  }
 0x204   :  { %v1377_v25 = vpop.f32.mrf.mxu0 }
 0x205   :  { %v1387_v0 = vmax.f32 %v1372_v54, %v1374_v1  ;;  %v1378_v20 = vadd.f32 %v1377_v25, %v1325_v60 }
 0x206   :  { %v1379_v17 = vpop.f32.mrf.mxu0 }
 0x207   :  { %v1380_v63 = vadd.f32 %v1379_v17, %v1327_v51 }
 0x208   :  { %v1381_v31 = vpop.f32.mrf.mxu0 }
 0x20a   :  { %v1383_v26 = vpop.f32.mrf.mxu0 }
 0x227   :  { %v1424_v48 = vpop.f32.mrf.mxu1 }
 0x229   :  { %v1426_v14 = vpop.f32.mrf.mxu1 }
 0x22b   :  { %v1428_v13 = vpop.f32.mrf.mxu1 }
 0x22d   :  { %v1430_v24 = vpop.f32.mrf.mxu1 }
 0x22f   :  { %v1434_v18 = vpop.f32.mrf.mxu1 }
 0x231   :  { %v1436_v6 = vpop.f32.mrf.mxu1 }
 0x233   :  { %v1438_v28 = vpop.f32.mrf.mxu1 }
 0x235   :  { %v1440_v33 = vpop.f32.mrf.mxu1 }
 0x23c   :  { %v1477_v23 = vpop.f32.mrf.mxu0 }
 0x23d   :  { %v1478_v21 = vadd.f32 %v1477_v23, %v1424_v48  ;;  %v1384_v23 = vadd.f32 %v1383_v26, %v1331_v8 }
 0x23e   :  { %v1479_v45 = vpop.f32.mrf.mxu0 }
 0x23f   :  { %v1480_v22 = vadd.f32 %v1479_v45, %v1426_v14 }
 0x240   :  { %v1481_v34 = vpop.f32.mrf.mxu0 }
 0x241   :  { %v1482_v46 = vadd.f32 %v1481_v34, %v1428_v13  ;;  %v1329_v13 = vadd.f32 %v3519_v42, %v3517_v16  ;;  %v2459_v42 = vld [vmem:[%s3572_s7 + $0x38] sm:$0xff]  }
 0x242   :  { %v1483_v19 = vpop.f32.mrf.mxu0 }
 0x243   :  { %v1484_v49 = vadd.f32 %v1483_v19, %v1430_v24  ;;  %v1388_v24 = vmax.f32 %v1378_v20, %v1380_v63 }
 0x244   :  { %v1487_v27 = vpop.f32.mrf.mxu0 }
 0x245   :  { %v1488_v3 = vadd.f32 %v1487_v27, %v1434_v18 }
 0x246   :  { %v1489_v10 = vpop.f32.mrf.mxu0 }
 0x247   :  { %v1530_v29 = vpop.f32.mrf.mxu1  ;;  %v1490_v7 = vadd.f32 %v1489_v10, %v1436_v6  ;;  %v1382_v6 = vadd.f32 %v1381_v31, %v1329_v13  ;;  %v2461_v10 = vld [vmem:[%s3572_s7 + $0x28] sm:$0xff]  }
 0x248   :  { %v1531_v39 = vadd.f32 %v1530_v29, %v1478_v21  ;;  %v1491_v52 = vpop.f32.mrf.mxu0 }
 0x249   :  { %v1532_v15 = vpop.f32.mrf.mxu1  ;;  %v1492_v2 = vadd.f32 %v1491_v52, %v1438_v28  ;;  %v1389_v27 = vmax.f32 %v1382_v6, %v1384_v23 }
 0x24a   :  { %v1533_v37 = vadd.f32 %v1532_v15, %v1480_v22  ;;  %v1493_v12 = vpop.f32.mrf.mxu0  ;;  %v2462_v15 = vld [vmem:[%s3572_s7 + $0x20] sm:$0xff]  }
 0x24b   :  { %v1534_v41 = vpop.f32.mrf.mxu1  ;;  %v1494_v17 = vadd.f32 %v1493_v12, %v1440_v33  ;;  %v2460_v33 = vld [vmem:[%s3572_s7 + $0x30] sm:$0xff]  }
 0x24c   :  { %v1549_v50 = vmax.f32 %v1531_v39, %v1533_v37  ;;  %v1535_v57 = vadd.f32 %v1534_v41, %v1482_v46  ;;  %v2464_v39 = vld [vmem:[%s3572_s7 + $0x10] sm:$0xff]   ;;  %v2465_v37 = vld [vmem:[%s3572_s7 + $0x8] sm:$0xff]  }
 0x24d   :  { %v1536_v53 = vpop.f32.mrf.mxu1 }
 0x24e   :  { %v1553_v56 = vmax.f32 %v1386_v40, %v1549_v50  ;;  %v1537_v59 = vadd.f32 %v1536_v53, %v1484_v49  ;;  %v2126_v50 = vld [vmem:[%s3574_s6] ss:$0 sm:$0xff] }
 0x24f   :  { %v1540_v61 = vpop.f32.mrf.mxu1 }
 0x250   :  { %v1550_v11 = vmax.f32 %v1535_v57, %v1537_v59  ;;  %v1563_v32 = vadd.f32 %v2125_v55, %v1553_v56  ;;  %v1541_v30 = vadd.f32 %v1540_v61, %v1488_v3 }
 0x251   :  { %v1542_v48 = vpop.f32.mrf.mxu1 }
 0x252   :  { %v1554_v44 = vmax.f32 %v1387_v0, %v1550_v11  ;;  %v1543_v14 = vadd.f32 %v1542_v48, %v1490_v7  ;;  %v1567_v34 = vmax.f32 %v1563_v32, 0.0 }
 0x253   :  { %v1544_v4 = vpop.f32.mrf.mxu1 }
 0x254   :  { %v1564_v45 = vadd.f32 %v2125_v55, %v1554_v44  ;;  %v1551_v18 = vmax.f32 %v1541_v30, %v1543_v14  ;;  %v1545_v19 = vadd.f32 %v1544_v4, %v1492_v2 }
 0x255   :  { %v1546_v62 = vpop.f32.mrf.mxu1 }
 0x256   :  { %v1568_v47 = vmax.f32 %v1564_v45, 0.0  ;;  %v1555_v25 = vmax.f32 %v1388_v24, %v1551_v18  ;;  %v1547_v43 = vadd.f32 %v1546_v62, %v1494_v17 }
 0x258   :  { %v1552_v36 = vmax.f32 %v1545_v19, %v1547_v43  ;;  %v1571_v35 = vpack.c.bf16 %v1568_v47, %v1567_v34  ;;  %v1565_v29 = vadd.f32 %v2125_v55, %v1555_v25 }
 0x25a   :  { %v1556_v21 = vmax.f32 %v1389_v27, %v1552_v36  ;;  %v1574_v16 = vrot.slane %v1571_v35, 4  ;;  %v1569_v31 = vmax.f32 %v1565_v29, 0.0 }
 0x25c   :  { %v1566_v26 = vadd.f32 %v2125_v55, %v1556_v21  ;;  %1809 = vmatprep.mubr.bf16.mxu0 %v1574_v16 }
 0x25d   :  { %1810 = vmatmul.mubr.bf16.vlgmr.msra.gmra.mxu0 %v1571_v35 }
 0x25e   :  { %v1570_v28 = vmax.f32 %v1566_v26, 0.0  ;;  %2222 = vmatpush3.bf16.msra.mxu0 %v2459_v42  ;;  %2237 = vmatprep.mubr.msk.bf16.mxu0 %vm2473_vm3, %v2472_v58 }
 0x25f   :  { %2223 = vmatprep.subr.bf16.mxu0 %v2472_v58 }
 0x260   :  { %v1572_v22 = vpack.c.bf16 %v1570_v28, %v1569_v31 }
 0x262   :  { %v1577_v5 = vrot.slane %v1572_v22, 4  ;;  %2224 = vmatpush3.bf16.msra.mxu0 %v2460_v33 }
 0x263   :  { %2225 = vmatprep.subr.bf16.mxu0 %v2472_v58 }
 0x264   :  { %1849 = vmatprep.mubr.bf16.mxu1 %v1577_v5 }
 0x265   :  { %1850 = vmatmul.mubr.bf16.vlgmr.msra.gmra.mxu1 %v1572_v22 }
 0x266   :  { %2226 = vmatpush3.bf16.msra.mxu0 %v2461_v10 }
 0x267   :  { %2227 = vmatprep.subr.bf16.mxu0 %v2472_v58 }
 0x26a   :  { %2228 = vmatpush3.bf16.msra.mxu0 %v2462_v15 }
 0x26b   :  { %2229 = vmatprep.subr.bf16.mxu0 %v2472_v58 }
 0x26e   :  { %2230 = vmatpush3.bf16.msra.mxu0 %v2463_v38 }
 0x26f   :  { %2231 = vmatprep.subr.bf16.mxu0 %v2472_v58 }
 0x272   :  { %2232 = vmatpush3.bf16.msra.mxu0 %v2464_v39 }
 0x273   :  { %2233 = vmatprep.subr.bf16.mxu0 %v2472_v58 }
 0x276   :  { %2234 = vmatpush3.bf16.msra.mxu0 %v2465_v37 }
 0x277   :  { %2235 = vmatprep.subr.bf16.mxu0 %v2472_v58  ;;  %v2159_v58 = vld [vmem:[%s3575_s8] ss:$0 sm:$0xff] }
 0x27a   :  { %2236 = vmatpush3.bf16.msra.mxu0 %v2466_v9 }
 0x31d   :  { %v2184_v40 = vpop.f32.mrf.mxu0 }
 0x31f   :  { %v2185_v41 = vpop.f32.mrf.mxu0 }
 0x320   :  { %v2186_v49 = vadd.f32 %v2185_v41, %v2184_v40 }
 0x321   :  { %v2187_v1 = vpop.f32.mrf.mxu0 }
 0x322   :  { %v1812_v53 = vadd.f32 %v2186_v49, %v2126_v50 }
 0x323   :  { %v2188_v46 = vpop.f32.mrf.mxu0 }
 0x325   :  { %v2206_v51 = vpop.f32.mrf.mxu1 }
 0x327   :  { %v2207_v52 = vpop.f32.mrf.mxu1 }
 0x328   :  { %v2208_v54 = vadd.f32 %v2207_v52, %v2206_v51 }
 0x329   :  { %v2209_v55 = vpop.f32.mrf.mxu1 }
 0x32a   :  { %v1852_v56 = vadd.f32 %v2208_v54, %v1812_v53 }
 0x32b   :  { %v2210_v57 = vpop.f32.mrf.mxu1 }
 0x32c   :  { %v1857_v59 = vmax.f32 %v1852_v56, 0.0 }
 0x32e   :  { %v1858_v60 = vpack.c.bf16 %v1857_v59, %v1857_v59 }
 0x330   :  { %2238 = vmatmul.mubr.bf16.vlgmr.msra.gmra.mxu0 %v1858_v60 }
 0x3f0   :  { %v1947_v63 = vpop.f32.mrf.mxu0 }
 0x3f1   :  { %v1948_v61 = vadd.f32 %v2159_v58, %v1947_v63 }
 0x3f2   :  { %v2239_v0 = vpop.f32.mrf.mxu0 }
 0x3f3   :  { %1953 = vmax.xlane.f32.xlu0 %v1948_v61 }
 0x3f4   :  { %v1950_v3 = vpop.f32.mrf.mxu0 }
 0x3f6   :  { %v2240_v7 = vpop.f32.mrf.mxu0 }
 0x47c   :  { %v1954_v11 = vpop.xlane.xlu0 %1953 }
 0x47d   :  { %v1955_v8 = vsub.f32 %v1948_v61, %v1954_v11 }
 0x47f   :  { %v1956_v20 = vmul.f32 1.442695, %v1955_v8 }
 0x481   :  { %2467 = vpow2.f32 %v1956_v20 }
 0x48e   :  { %v2468_v32 = vpop.eup %2467 }
 0x48f   :  { %1958 = vadd.xlane.f32.xlu0 %v2468_v32 }
 0x518   :  { %v1959_v12 = vpop.xlane.xlu0 %1958 }
 0x519   :  { %2469 = vlog2.f32 %v1959_v12 }
 0x526   :  { %v2470_v48 = vpop.eup %2469 }
 0x527   :  { %v1961_v44 = vmul.f32 0.6931472, %v2470_v48 }
 0x529   :  { %v1962_v30 = vsub.f32 %v1955_v8, %v1961_v44 }
 0x52b   :  { %1963 = vst [vmem:[%s3576_s9] sm:$0xff] %v1962_v30 }

</bundles_post_ra>
